<compile_context>
chip_gen: v7x
topology: tpu7x:2x2x1
jax: 0.10.0
libtpu: 0.0.40
codegen_flags: <defaults>
</compile_context>

<pallas_src>
import functools

import jax
import jax.numpy as jnp
from jax.experimental import pallas as pl
from jax.experimental.pallas import tpu as pltpu


# ----------------------------------------------------------------------------
# Fused forward kernel (single pallas_call, everything resident in VMEM)
# ----------------------------------------------------------------------------
def _fused_forward_kernel(uw_ref, iw_ref, ui_ref, iu_ref, cui_ref, ciu_ref,
                          user_out_ref, item_out_ref, *,
                          id_conv_layers, n_layers, id_cat_rate, emb_dim):
    f32 = jnp.float32
    uw = uw_ref[...]      # (n_users, emb)      user_id_embedding.weight
    iw = iw_ref[...]      # (n_items, emb)      item_id_embedding.weight
    ui = ui_ref[...]      # (n_users, n_items)  normalized ui graph
    iu = iu_ref[...]      # (n_items, n_users)  normalized iu graph
    cui = cui_ref[...]    # (n_users, 2*n_items) = [img_ui | txt_ui]
    ciu = ciu_ref[...]    # (n_items, 2*n_users) = [img_iu | txt_iu]

    def blockdiag(pair):
        # pair = [A | B] (rows, 2*emb)  ->  [[A, 0], [0, B]]  (2*rows, 2*emb)
        a = pair[:, :emb_dim]
        b = pair[:, emb_dim:]
        top = jnp.concatenate([a, jnp.zeros_like(a)], axis=1)
        bot = jnp.concatenate([jnp.zeros_like(b), b], axis=1)
        return jnp.concatenate([top, bot], axis=0)

    # ---- id graph convolutions; image & text branches batched into one MXU
    #      call each (K = 2*n_items / 2*n_users, N = 2*emb) -------------------
    user_pair = jnp.concatenate([uw, uw], axis=1)   # [img_user_id | txt_user_id]
    item_pair = jnp.concatenate([iw, iw], axis=1)   # [img_item_id | txt_item_id]
    for _ in range(id_conv_layers):                 # static Python loop (unrolled)
        user_pair = jnp.dot(cui, blockdiag(item_pair), preferred_element_type=f32)
        item_pair = jnp.dot(ciu, blockdiag(user_pair), preferred_element_type=f32)

    image_user_id = user_pair[:, :emb_dim]
    text_user_id = user_pair[:, emb_dim:]
    image_item_id = item_pair[:, :emb_dim]
    text_item_id = item_pair[:, emb_dim:]

    # ---- 0.5*img + 0.5*txt, then base + rate * L2-row-normalize -------------
    def add_scaled_rownorm(base, x):
        ss = jnp.sum(x * x, axis=1, keepdims=True)
        # rsqrt goes to the EUP slot; == x / max(||x||, 1e-12) (torch eps clamp)
        inv = jax.lax.rsqrt(jnp.maximum(ss, 1e-24))
        return base + id_cat_rate * (x * inv)

    u_g = add_scaled_rownorm(uw, 0.5 * (image_user_id + text_user_id))
    i_g = add_scaled_rownorm(iw, 0.5 * (image_item_id + text_item_id))

    # ---- graph propagation with running-sum accumulator for the layer mean --
    def row_softmax(x):
        m = jnp.max(x, axis=-1, keepdims=True)
        e = jnp.exp(x - m)
        return e * pl.reciprocal(jnp.sum(e, axis=-1, keepdims=True), approx=True)

    u_sum = u_g
    i_sum = i_g
    for layer in range(n_layers):                   # static Python loop (unrolled)
        u_g = jnp.dot(ui, i_g, preferred_element_type=f32)
        if layer == n_layers - 1:
            u_g = row_softmax(u_g)
        i_g = jnp.dot(iu, u_g, preferred_element_type=f32)
        if layer == n_layers - 1:
            i_g = row_softmax(i_g)
        u_sum = u_sum + u_g
        i_sum = i_sum + i_g

    inv_cnt = 1.0 / float(n_layers + 1)
    u_mean = u_sum * inv_cnt
    i_mean = i_sum * inv_cnt

    # ---- lane-dense packed outputs: 4*emb = 128 lanes -> unmasked stores ----
    # layout: [mean | image_id | text_id | zero-pad]
    user_out_ref[...] = jnp.concatenate(
        [u_mean, image_user_id, text_user_id, jnp.zeros_like(u_mean)], axis=1)
    item_out_ref[...] = jnp.concatenate(
        [i_mean, image_item_id, text_item_id, jnp.zeros_like(i_mean)], axis=1)


# ----------------------------------------------------------------------------
# MyModel.forward equivalent (dense graphs = sparse=False branch)
# ----------------------------------------------------------------------------
def my_model_forward(user_id_weight, item_id_weight,
                     ui_graph, iu_graph,
                     new_image_ui_graph, new_image_iu_graph,
                     new_text_ui_graph, new_text_iu_graph,
                     *, id_conv_layers, n_layers, id_cat_rate):
    n_users, emb_dim = user_id_weight.shape
    n_items = item_id_weight.shape[0]
    f32 = jnp.float32

    # one-time prep: image & text branch graphs side-by-side along K
    conv_ui = jnp.concatenate([new_image_ui_graph, new_text_ui_graph], axis=1)
    conv_iu = jnp.concatenate([new_image_iu_graph, new_text_iu_graph], axis=1)

    kernel = functools.partial(
        _fused_forward_kernel,
        id_conv_layers=id_conv_layers, n_layers=n_layers,
        id_cat_rate=float(id_cat_rate), emb_dim=emb_dim)

    vmem = lambda: pl.BlockSpec(memory_space=pltpu.MemorySpace.VMEM)
    user_packed, item_packed = pl.pallas_call(
        kernel,
        out_shape=(jax.ShapeDtypeStruct((n_users, 4 * emb_dim), f32),
                   jax.ShapeDtypeStruct((n_items, 4 * emb_dim), f32)),
        in_specs=[vmem() for _ in range(6)],
        out_specs=(vmem(), vmem()),
        compiler_params=pltpu.CompilerParams(vmem_limit_bytes=32 * 1024 * 1024),
    )(user_id_weight.astype(f32), item_id_weight.astype(f32),
      ui_graph.astype(f32), iu_graph.astype(f32),
      conv_ui.astype(f32), conv_iu.astype(f32))

    u_out = user_packed[:, :emb_dim]
    image_user_id = user_packed[:, emb_dim:2 * emb_dim]
    text_user_id = user_packed[:, 2 * emb_dim:3 * emb_dim]
    i_out = item_packed[:, :emb_dim]
    image_item_id = item_packed[:, emb_dim:2 * emb_dim]
    text_item_id = item_packed[:, 2 * emb_dim:3 * emb_dim]
    return (u_out, i_out, image_user_id, text_user_id,
            image_item_id, text_item_id)


# ----------------------------------------------------------------------------
# Pure-JAX reference (mirrors the PyTorch forward) for a correctness check
# ----------------------------------------------------------------------------
def _forward_reference(uw, iw, ui, iu, img_ui, img_iu, txt_ui, txt_iu,
                       *, id_conv_layers, n_layers, id_cat_rate):
    img_u = txt_u = uw
    img_i = txt_i = iw
    for _ in range(id_conv_layers):
        img_u = img_ui @ img_i
        img_i = img_iu @ img_u
        txt_u = txt_ui @ txt_i
        txt_i = txt_iu @ txt_u
    user_emb = 0.5 * img_u + 0.5 * txt_u
    item_emb = 0.5 * img_i + 0.5 * txt_i

    def norm(x):
        n = jnp.sqrt(jnp.sum(x * x, axis=1, keepdims=True))
        return x / jnp.maximum(n, 1e-12)

    u_g = uw + id_cat_rate * norm(user_emb)
    i_g = iw + id_cat_rate * norm(item_emb)
    ul, il = [u_g], [i_g]
    for layer in range(n_layers):
        if layer == n_layers - 1:
            u_g = jax.nn.softmax(ui @ i_g, axis=-1)
            i_g = jax.nn.softmax(iu @ u_g, axis=-1)
        else:
            u_g = ui @ i_g
            i_g = iu @ u_g
        ul.append(u_g)
        il.append(i_g)
    return (jnp.mean(jnp.stack(ul), axis=0), jnp.mean(jnp.stack(il), axis=0),
            img_u, txt_u, img_i, txt_i)


# ----------------------------------------------------------------------------
# Main
# ----------------------------------------------------------------------------
if __name__ == "__main__":
    n_users, n_items, emb_dim = 48, 64, 32
    id_conv_layers = 2
    n_layers = 2          # len(eval(args.weight_size)) == 2
    id_cat_rate = 0.36

    key = jax.random.PRNGKey(0)
    ks = jax.random.split(key, 8)

    def xavier(k, shape):
        fan_in, fan_out = shape[1], shape[0]
        bound = (6.0 / (fan_in + fan_out)) ** 0.5
        return jax.random.uniform(k, shape, jnp.float32, -bound, bound)

    user_id_weight = xavier(ks[0], (n_users, emb_dim))
    item_id_weight = xavier(ks[1], (n_items, emb_dim))

    # dense stand-ins for the (normalized / rebuilt) sparse graphs
    ui_graph = jax.random.uniform(ks[2], (n_users, n_items), jnp.float32) / n_items
    iu_graph = jax.random.uniform(ks[3], (n_items, n_users), jnp.float32) / n_users
    new_image_ui = jax.random.uniform(ks[4], (n_users, n_items), jnp.float32) / n_items
    new_image_iu = jax.random.uniform(ks[5], (n_items, n_users), jnp.float32) / n_users
    new_text_ui = jax.random.uniform(ks[6], (n_users, n_items), jnp.float32) / n_items
    new_text_iu = jax.random.uniform(ks[7], (n_items, n_users), jnp.float32) / n_users

    fwd = jax.jit(functools.partial(
        my_model_forward,
        id_conv_layers=id_conv_layers,
        n_layers=n_layers,
        id_cat_rate=id_cat_rate))

    outs = jax.block_until_ready(fwd(user_id_weight, item_id_weight,
                                     ui_graph, iu_graph,
                                     new_image_ui, new_image_iu,
                                     new_text_ui, new_text_iu))

    u_g, i_g, img_u, txt_u, img_i, txt_i = outs
    assert u_g.shape == (n_users, emb_dim)
    assert i_g.shape == (n_items, emb_dim)
    assert img_u.shape == (n_users, emb_dim) and txt_u.shape == (n_users, emb_dim)
    assert img_i.shape == (n_items, emb_dim) and txt_i.shape == (n_items, emb_dim)

    refs = _forward_reference(user_id_weight, item_id_weight,
                              ui_graph, iu_graph,
                              new_image_ui, new_image_iu,
                              new_text_ui, new_text_iu,
                              id_conv_layers=id_conv_layers,
                              n_layers=n_layers, id_cat_rate=id_cat_rate)
    for got, want in zip(outs, refs):
        assert bool(jnp.allclose(got, want, rtol=5e-2, atol=1e-3)), \
            f"mismatch: max|diff|={float(jnp.max(jnp.abs(got - want)))}"

    # TODO(synk): the original module's sparse=True path (torch sparse graphs)
    # is represented here by dense graph matmuls (the sparse=False branch).
    print("KERNEL_OK")
</pallas_src>

<mosaic_0001>
module attributes {stable_mosaic.version = 11 : i64} {
  func.func @_fused_forward_kernel(%arg0: memref<48x32xf32, #tpu.memory_space<vmem>>, %arg1: memref<64x32xf32, #tpu.memory_space<vmem>>, %arg2: memref<48x64xf32, #tpu.memory_space<vmem>>, %arg3: memref<64x48xf32, #tpu.memory_space<vmem>>, %arg4: memref<48x128xf32, #tpu.memory_space<vmem>>, %arg5: memref<64x96xf32, #tpu.memory_space<vmem>>, %arg6: memref<48x128xf32, #tpu.memory_space<vmem>>, %arg7: memref<64x128xf32, #tpu.memory_space<vmem>>) attributes {dimension_semantics = [], scalar_prefetch = 0 : i64, scratch_operands = 0 : i64, tpu.core_type = #tpu.core_type<tc>} {
    %c0 = arith.constant 0 : index
    %c0_0 = arith.constant 0 : index
    %0 = vector.load %arg0[%c0, %c0_0] : memref<48x32xf32, #tpu.memory_space<vmem>>, vector<48x32xf32>
    %c0_1 = arith.constant 0 : index
    %c0_2 = arith.constant 0 : index
    %1 = vector.load %arg1[%c0_1, %c0_2] : memref<64x32xf32, #tpu.memory_space<vmem>>, vector<64x32xf32>
    %c0_3 = arith.constant 0 : index
    %c0_4 = arith.constant 0 : index
    %2 = vector.load %arg2[%c0_3, %c0_4] : memref<48x64xf32, #tpu.memory_space<vmem>>, vector<48x64xf32>
    %c0_5 = arith.constant 0 : index
    %c0_6 = arith.constant 0 : index
    %3 = vector.load %arg3[%c0_5, %c0_6] : memref<64x48xf32, #tpu.memory_space<vmem>>, vector<64x48xf32>
    %c0_7 = arith.constant 0 : index
    %c0_8 = arith.constant 0 : index
    %4 = vector.load %arg4[%c0_7, %c0_8] : memref<48x128xf32, #tpu.memory_space<vmem>>, vector<48x128xf32>
    %c0_9 = arith.constant 0 : index
    %c0_10 = arith.constant 0 : index
    %5 = vector.load %arg5[%c0_9, %c0_10] : memref<64x96xf32, #tpu.memory_space<vmem>>, vector<64x96xf32>
    %6 = tpu.concatenate %1, %1 in 1 : vector<64x32xf32>, vector<64x32xf32> -> vector<64x64xf32>
    %7 = vector.extract_strided_slice %6 {offsets = [0, 0], sizes = [64, 32], strides = [1, 1]} : vector<64x64xf32> to vector<64x32xf32>
    %8 = vector.extract_strided_slice %6 {offsets = [0, 32], sizes = [64, 32], strides = [1, 1]} : vector<64x64xf32> to vector<64x32xf32>
    %cst = arith.constant 0.000000e+00 : f32
    %9 = vector.broadcast %cst : f32 to vector<64x32xf32>
    %10 = tpu.concatenate %7, %9 in 1 : vector<64x32xf32>, vector<64x32xf32> -> vector<64x64xf32>
    %cst_11 = arith.constant 0.000000e+00 : f32
    %11 = vector.broadcast %cst_11 : f32 to vector<64x32xf32>
    %12 = tpu.concatenate %11, %8 in 1 : vector<64x32xf32>, vector<64x32xf32> -> vector<64x64xf32>
    %13 = tpu.concatenate %10, %12 in 0 : vector<64x64xf32>, vector<64x64xf32> -> vector<128x64xf32>
    %cst_12 = arith.constant dense<0.000000e+00> : vector<48x64xf32>
    %14 = tpu.matmul %4, %13, %cst_12 {dimension_numbers = #tpu.dot_dimension_numbers<[1], [0], [0], [1], [0, 0, 1, 1], [], []>} : vector<48x128xf32>, vector<128x64xf32>, vector<48x64xf32> -> vector<48x64xf32>
    %15 = vector.extract_strided_slice %14 {offsets = [0, 0], sizes = [48, 32], strides = [1, 1]} : vector<48x64xf32> to vector<48x32xf32>
    %16 = vector.extract_strided_slice %14 {offsets = [0, 32], sizes = [48, 32], strides = [1, 1]} : vector<48x64xf32> to vector<48x32xf32>
    %cst_13 = arith.constant 0.000000e+00 : f32
    %17 = vector.broadcast %cst_13 : f32 to vector<48x32xf32>
    %18 = tpu.concatenate %15, %17 in 1 : vector<48x32xf32>, vector<48x32xf32> -> vector<48x64xf32>
    %cst_14 = arith.constant 0.000000e+00 : f32
    %19 = vector.broadcast %cst_14 : f32 to vector<48x32xf32>
    %20 = tpu.concatenate %19, %16 in 1 : vector<48x32xf32>, vector<48x32xf32> -> vector<48x64xf32>
    %21 = tpu.concatenate %18, %20 in 0 : vector<48x64xf32>, vector<48x64xf32> -> vector<96x64xf32>
    %cst_15 = arith.constant dense<0.000000e+00> : vector<64x64xf32>
    %22 = tpu.matmul %5, %21, %cst_15 {dimension_numbers = #tpu.dot_dimension_numbers<[1], [0], [0], [1], [0, 0, 1, 1], [], []>} : vector<64x96xf32>, vector<96x64xf32>, vector<64x64xf32> -> vector<64x64xf32>
    %23 = vector.extract_strided_slice %22 {offsets = [0, 0], sizes = [64, 32], strides = [1, 1]} : vector<64x64xf32> to vector<64x32xf32>
    %24 = vector.extract_strided_slice %22 {offsets = [0, 32], sizes = [64, 32], strides = [1, 1]} : vector<64x64xf32> to vector<64x32xf32>
    %cst_16 = arith.constant 0.000000e+00 : f32
    %25 = vector.broadcast %cst_16 : f32 to vector<64x32xf32>
    %26 = tpu.concatenate %23, %25 in 1 : vector<64x32xf32>, vector<64x32xf32> -> vector<64x64xf32>
    %cst_17 = arith.constant 0.000000e+00 : f32
    %27 = vector.broadcast %cst_17 : f32 to vector<64x32xf32>
    %28 = tpu.concatenate %27, %24 in 1 : vector<64x32xf32>, vector<64x32xf32> -> vector<64x64xf32>
    %29 = tpu.concatenate %26, %28 in 0 : vector<64x64xf32>, vector<64x64xf32> -> vector<128x64xf32>
    %cst_18 = arith.constant dense<0.000000e+00> : vector<48x64xf32>
    %30 = tpu.matmul %4, %29, %cst_18 {dimension_numbers = #tpu.dot_dimension_numbers<[1], [0], [0], [1], [0, 0, 1, 1], [], []>} : vector<48x128xf32>, vector<128x64xf32>, vector<48x64xf32> -> vector<48x64xf32>
    %31 = vector.extract_strided_slice %30 {offsets = [0, 0], sizes = [48, 32], strides = [1, 1]} : vector<48x64xf32> to vector<48x32xf32>
    %32 = vector.extract_strided_slice %30 {offsets = [0, 32], sizes = [48, 32], strides = [1, 1]} : vector<48x64xf32> to vector<48x32xf32>
    %cst_19 = arith.constant 0.000000e+00 : f32
    %33 = vector.broadcast %cst_19 : f32 to vector<48x32xf32>
    %34 = tpu.concatenate %31, %33 in 1 : vector<48x32xf32>, vector<48x32xf32> -> vector<48x64xf32>
    %cst_20 = arith.constant 0.000000e+00 : f32
    %35 = vector.broadcast %cst_20 : f32 to vector<48x32xf32>
    %36 = tpu.concatenate %35, %32 in 1 : vector<48x32xf32>, vector<48x32xf32> -> vector<48x64xf32>
    %37 = tpu.concatenate %34, %36 in 0 : vector<48x64xf32>, vector<48x64xf32> -> vector<96x64xf32>
    %cst_21 = arith.constant dense<0.000000e+00> : vector<64x64xf32>
    %38 = tpu.matmul %5, %37, %cst_21 {dimension_numbers = #tpu.dot_dimension_numbers<[1], [0], [0], [1], [0, 0, 1, 1], [], []>} : vector<64x96xf32>, vector<96x64xf32>, vector<64x64xf32> -> vector<64x64xf32>
    %39 = vector.extract_strided_slice %30 {offsets = [0, 0], sizes = [48, 32], strides = [1, 1]} : vector<48x64xf32> to vector<48x32xf32>
    %40 = vector.extract_strided_slice %30 {offsets = [0, 32], sizes = [48, 32], strides = [1, 1]} : vector<48x64xf32> to vector<48x32xf32>
    %41 = vector.extract_strided_slice %38 {offsets = [0, 0], sizes = [64, 32], strides = [1, 1]} : vector<64x64xf32> to vector<64x32xf32>
    %42 = vector.extract_strided_slice %38 {offsets = [0, 32], sizes = [64, 32], strides = [1, 1]} : vector<64x64xf32> to vector<64x32xf32>
    %43 = arith.addf %39, %40 : vector<48x32xf32>
    %cst_22 = arith.constant 5.000000e-01 : f32
    %44 = vector.broadcast %cst_22 : f32 to vector<48x32xf32>
    %45 = arith.mulf %44, %43 : vector<48x32xf32>
    %46 = arith.mulf %45, %45 : vector<48x32xf32>
    %cst_23 = arith.constant dense<0.000000e+00> : vector<48xf32>
    %47 = vector.multi_reduction <add>, %46, %cst_23 [1] : vector<48x32xf32> to vector<48xf32>
    %48 = vector.shape_cast %47 : vector<48xf32> to vector<48x1xf32>
    %cst_24 = arith.constant 1.000000e-24 : f32
    %49 = vector.broadcast %cst_24 : f32 to vector<48x1xf32>
    %50 = arith.maximumf %48, %49 : vector<48x1xf32>
    %51 = math.rsqrt %50 : vector<48x1xf32>
    %52 = vector.broadcast %51 : vector<48x1xf32> to vector<48x32xf32>
    %53 = arith.mulf %45, %52 : vector<48x32xf32>
    %cst_25 = arith.constant 3.600000e-01 : f32
    %54 = vector.broadcast %cst_25 : f32 to vector<48x32xf32>
    %55 = arith.mulf %54, %53 : vector<48x32xf32>
    %56 = arith.addf %0, %55 : vector<48x32xf32>
    %57 = arith.addf %41, %42 : vector<64x32xf32>
    %cst_26 = arith.constant 5.000000e-01 : f32
    %58 = vector.broadcast %cst_26 : f32 to vector<64x32xf32>
    %59 = arith.mulf %58, %57 : vector<64x32xf32>
    %60 = arith.mulf %59, %59 : vector<64x32xf32>
    %cst_27 = arith.constant dense<0.000000e+00> : vector<64xf32>
    %61 = vector.multi_reduction <add>, %60, %cst_27 [1] : vector<64x32xf32> to vector<64xf32>
    %62 = vector.shape_cast %61 : vector<64xf32> to vector<64x1xf32>
    %cst_28 = arith.constant 1.000000e-24 : f32
    %63 = vector.broadcast %cst_28 : f32 to vector<64x1xf32>
    %64 = arith.maximumf %62, %63 : vector<64x1xf32>
    %65 = math.rsqrt %64 : vector<64x1xf32>
    %66 = vector.broadcast %65 : vector<64x1xf32> to vector<64x32xf32>
    %67 = arith.mulf %59, %66 : vector<64x32xf32>
    %cst_29 = arith.constant 3.600000e-01 : f32
    %68 = vector.broadcast %cst_29 : f32 to vector<64x32xf32>
    %69 = arith.mulf %68, %67 : vector<64x32xf32>
    %70 = arith.addf %1, %69 : vector<64x32xf32>
    %cst_30 = arith.constant dense<0.000000e+00> : vector<48x32xf32>
    %71 = tpu.matmul %2, %70, %cst_30 {dimension_numbers = #tpu.dot_dimension_numbers<[1], [0], [0], [1], [0, 0, 1, 1], [], []>} : vector<48x64xf32>, vector<64x32xf32>, vector<48x32xf32> -> vector<48x32xf32>
    %cst_31 = arith.constant dense<0.000000e+00> : vector<64x32xf32>
    %72 = tpu.matmul %3, %71, %cst_31 {dimension_numbers = #tpu.dot_dimension_numbers<[1], [0], [0], [1], [0, 0, 1, 1], [], []>} : vector<64x48xf32>, vector<48x32xf32>, vector<64x32xf32> -> vector<64x32xf32>
    %73 = arith.addf %56, %71 : vector<48x32xf32>
    %74 = arith.addf %70, %72 : vector<64x32xf32>
    %cst_32 = arith.constant dense<0.000000e+00> : vector<48x32xf32>
    %75 = tpu.matmul %2, %72, %cst_32 {dimension_numbers = #tpu.dot_dimension_numbers<[1], [0], [0], [1], [0, 0, 1, 1], [], []>} : vector<48x64xf32>, vector<64x32xf32>, vector<48x32xf32> -> vector<48x32xf32>
    %cst_33 = arith.constant dense<0xFF800000> : vector<48xf32>
    %76 = vector.multi_reduction <maximumf>, %75, %cst_33 [1] : vector<48x32xf32> to vector<48xf32>
    %77 = vector.shape_cast %76 : vector<48xf32> to vector<48x1xf32>
    %78 = vector.broadcast %77 : vector<48x1xf32> to vector<48x32xf32>
    %79 = arith.subf %75, %78 : vector<48x32xf32>
    %80 = math.exp %79 : vector<48x32xf32>
    %cst_34 = arith.constant dense<0.000000e+00> : vector<48xf32>
    %81 = vector.multi_reduction <add>, %80, %cst_34 [1] : vector<48x32xf32> to vector<48xf32>
    %82 = vector.shape_cast %81 : vector<48xf32> to vector<48x1xf32>
    %83 = tpu.reciprocal %82 {approx = true} : vector<48x1xf32> -> vector<48x1xf32>
    %84 = vector.broadcast %83 : vector<48x1xf32> to vector<48x32xf32>
    %85 = arith.mulf %80, %84 : vector<48x32xf32>
    %cst_35 = arith.constant dense<0.000000e+00> : vector<64x32xf32>
    %86 = tpu.matmul %3, %85, %cst_35 {dimension_numbers = #tpu.dot_dimension_numbers<[1], [0], [0], [1], [0, 0, 1, 1], [], []>} : vector<64x48xf32>, vector<48x32xf32>, vector<64x32xf32> -> vector<64x32xf32>
    %cst_36 = arith.constant dense<0xFF800000> : vector<64xf32>
    %87 = vector.multi_reduction <maximumf>, %86, %cst_36 [1] : vector<64x32xf32> to vector<64xf32>
    %88 = vector.shape_cast %87 : vector<64xf32> to vector<64x1xf32>
    %89 = vector.broadcast %88 : vector<64x1xf32> to vector<64x32xf32>
    %90 = arith.subf %86, %89 : vector<64x32xf32>
    %91 = math.exp %90 : vector<64x32xf32>
    %cst_37 = arith.constant dense<0.000000e+00> : vector<64xf32>
    %92 = vector.multi_reduction <add>, %91, %cst_37 [1] : vector<64x32xf32> to vector<64xf32>
    %93 = vector.shape_cast %92 : vector<64xf32> to vector<64x1xf32>
    %94 = tpu.reciprocal %93 {approx = true} : vector<64x1xf32> -> vector<64x1xf32>
    %95 = vector.broadcast %94 : vector<64x1xf32> to vector<64x32xf32>
    %96 = arith.mulf %91, %95 : vector<64x32xf32>
    %97 = arith.addf %73, %85 : vector<48x32xf32>
    %98 = arith.addf %74, %96 : vector<64x32xf32>
    %cst_38 = arith.constant 0.333333343 : f32
    %99 = vector.broadcast %cst_38 : f32 to vector<48x32xf32>
    %100 = arith.mulf %97, %99 : vector<48x32xf32>
    %cst_39 = arith.constant 0.333333343 : f32
    %101 = vector.broadcast %cst_39 : f32 to vector<64x32xf32>
    %102 = arith.mulf %98, %101 : vector<64x32xf32>
    %cst_40 = arith.constant 0.000000e+00 : f32
    %103 = vector.broadcast %cst_40 : f32 to vector<48x32xf32>
    %104 = tpu.concatenate %100, %39, %40, %103 in 1 : vector<48x32xf32>, vector<48x32xf32>, vector<48x32xf32>, vector<48x32xf32> -> vector<48x128xf32>
    %c0_41 = arith.constant 0 : index
    %c0_42 = arith.constant 0 : index
    %105 = vector.load %arg6[%c0_41, %c0_42] : memref<48x128xf32, #tpu.memory_space<vmem>>, vector<48x128xf32>
    tpu.vector_store %arg6[%c0_41, %c0_42], %104 {strides = array<i32>} : memref<48x128xf32, #tpu.memory_space<vmem>>, vector<48x128xf32>,
    %cst_43 = arith.constant 0.000000e+00 : f32
    %106 = vector.broadcast %cst_43 : f32 to vector<64x32xf32>
    %107 = tpu.concatenate %102, %41, %42, %106 in 1 : vector<64x32xf32>, vector<64x32xf32>, vector<64x32xf32>, vector<64x32xf32> -> vector<64x128xf32>
    %c0_44 = arith.constant 0 : index
    %c0_45 = arith.constant 0 : index
    %108 = vector.load %arg7[%c0_44, %c0_45] : memref<64x128xf32, #tpu.memory_space<vmem>>, vector<64x128xf32>
    tpu.vector_store %arg7[%c0_44, %c0_45], %107 {strides = array<i32>} : memref<64x128xf32, #tpu.memory_space<vmem>>, vector<64x128xf32>,
    return
  }
}

</mosaic_0001>

<bundles_post_ra>
// kernel: my_model_forward.1
= control target key start
LH: loop header
LB: loop body
LE: loop exit
PB: predicated region body
PF: predicated region fallthrough
CT: control target
= control target key end

     0   :  { %s2395_s17 = smov 32   ;;  %vm99_vm0 = vcmask 261120   ;;  %vm231_vm4 = vcmask 785408   ;;  %vm799_vm5 = vcmask 523264   ;;  %vm913_vm6 = vcmask 392192   ;;  %s3360_s1 = inlined_call_operand.vmem [shape: f32[64,32], index: 1, kind: input, shape index: {}]   ;;  %s3361_s4 = inlined_call_operand.vmem [shape: f32[48,128], index: 4, kind: input, shape index: {}]   ;;  %s3362_s5 = inlined_call_operand.vmem [shape: f32[64,96], index: 5, kind: input, shape index: {}]   ;;  %s3363_s2 = inlined_call_operand.vmem [shape: f32[48,64], index: 2, kind: input, shape index: {}]   ;;  %s3364_s3 = inlined_call_operand.vmem [shape: f32[64,48], index: 3, kind: input, shape index: {}]   ;;  %s3365_s0 = inlined_call_operand.vmem [shape: f32[48,32], index: 0, kind: input, shape index: {}]   ;;  %s3366_s6 = inlined_call_operand.vmem [shape: f32[48,128], index: 6, kind: output, shape index: {0}]   ;;  %s3367_s7 = inlined_call_operand.vmem [shape: f32[64,128], index: 7, kind: output, shape index: {1}]  }
   0x1   :  { %v2440_v0 = vld [vmem:[%s3360_s1] sm:$0xff]  ;;  %v2445_v1 = vld [vmem:[%s3360_s1 + $0x8] sm:$0xff]  ;;  %v2450_v2 = vld [vmem:[%s3360_s1 + $0x10] sm:$0xff] }
   0x2   :  { %v2291_v3 = vpack.i.bf16 %v2445_v1, %v2440_v0  ;;  %v2457_v4 = vld [vmem:[%s3360_s1 + $0x18] sm:$0xff]  ;;  %v2462_v5 = vld [vmem:[%s3360_s1 + $0x20] sm:$0xff]  ;;  %v2467_v6 = vld [vmem:[%s3360_s1 + $0x28] sm:$0xff] }
   0x3   :  { %v2301_v7 = vpack.i.bf16 %v2467_v6, %v2462_v5  ;;  %v2474_v8 = vld [vmem:[%s3360_s1 + $0x30] sm:$0xff]  ;;  %v2479_v9 = vld [vmem:[%s3360_s1 + $0x38] sm:$0xff]  ;;  %v2296_v10 = vpack.i.bf16 %v2457_v4, %v2450_v2  ;;  %v2492_v12 = vld [vmem:[%s3361_s4] sm:$0xff] }
   0x4   :  { %2292 = vrot.lane.b32.xlu0 %v2291_v3, %s2395_s17  ;;  %v2306_v11 = vpack.i.bf16 %v2479_v9, %v2474_v8  ;;  %1845 = vmatprep.mubr.f32.mxu0 %v2492_v12  ;;  %vm2501_vm1 = vmpackc.low %vm99_vm0, %vm99_vm0  ;;  %v2557_v39 = vld [vmem:[%s3361_s4 + $0x8] sm:$0xff]  ;;  %v2562_v40 = vld [vmem:[%s3361_s4 + $0x10] sm:$0xff] }
   0x5   :  { %2302 = vrot.lane.b32.xlu1 %v2301_v7, %s2395_s17  ;;  %vm1553_vm2 = vmneg %vm99_vm0  ;;  %v2569_v41 = vld [vmem:[%s3361_s4 + $0x18] sm:$0xff]  ;;  %v2574_v42 = vld [vmem:[%s3361_s4 + $0x20] sm:$0xff] }
   0x6   :  { %vm2532_vm3 = vmpackc.low %vm1553_vm2, %vm1553_vm2  ;;  %v2581_v43 = vld [vmem:[%s3361_s4 + $0x28] sm:$0xff]  ;;  %v59_v44 = vld [vmem:[%s3362_s5] sm:$0xff] }
   0x7   :  { %1878 = vmatprep.mubr.msk.f32.mxu1 %vm231_vm4, %v59_v44  ;;  %v2616_v54 = vld [vmem:[%s3362_s5 + $0x8] sm:$0xff]  ;;  %v2621_v55 = vld [vmem:[%s3362_s5 + $0x10] sm:$0xff]  ;;  %v2630_v56 = vld [vmem:[%s3362_s5 + $0x18] sm:$0xff] }
   0x8   :  { %2297 = vrot.lane.b32.xlu0 %v2296_v10, %s2395_s17  ;;  %v2635_v57 = vld [vmem:[%s3362_s5 + $0x20] sm:$0xff]  ;;  %v2644_v58 = vld [vmem:[%s3362_s5 + $0x28] sm:$0xff]  ;;  %v2649_v59 = vld [vmem:[%s3362_s5 + $0x30] sm:$0xff] }
   0x9   :  { %2307 = vrot.lane.b32.xlu1 %v2306_v11, %s2395_s17  ;;  %v2658_v60 = vld [vmem:[%s3362_s5 + $0x38] sm:$0xff]  ;;  %s2396_s5 = smov 96  }
  0x76   :  { %v2293_v13 = vpop.permute.xlu0 %2292 }
  0x77   :  { %v2295_v14 = vunpack.i.h.bf16 %v2293_v13  ;;  %v2294_v15 = vunpack.i.l.bf16 %v2293_v13  ;;  %v2303_v16 = vpop.permute.xlu1 %2302 }
  0x78   :  { %v2305_v17 = vunpack.i.h.bf16 %v2303_v16  ;;  %v2304_v18 = vunpack.i.l.bf16 %v2303_v16 }
  0x79   :  { %v101_v19 = vsel %vm99_vm0, %v2445_v1, %v2295_v14  ;;  %v100_v20 = vsel %vm99_vm0, %v2440_v0, %v2294_v15 }
  0x7a   :  { %v2065_v22 = vpack.c.bf16 %v101_v19, %v100_v20  ;;  %v2298_v23 = vpop.permute.xlu0 %2297  ;;  %v105_v26 = vsel %vm99_vm0, %v2467_v6, %v2305_v17  ;;  %v104_v27 = vsel %vm99_vm0, %v2462_v5, %v2304_v18 }
  0x7b   :  { %v2300_v24 = vunpack.i.h.bf16 %v2298_v23  ;;  %v2299_v25 = vunpack.i.l.bf16 %v2298_v23  ;;  %v2308_v28 = vpop.permute.xlu1 %2307  ;;  %v2077_v34 = vpack.c.bf16 %v105_v26, %v104_v27 }
  0x7c   :  { %2067 = vmatprep.subr.msk.bf16.mxu0 %vm2501_vm1, %v2065_v22  ;;  %v2310_v29 = vunpack.i.h.bf16 %v2308_v28  ;;  %v2309_v30 = vunpack.i.l.bf16 %v2308_v28 }
  0x7d   :  { %v103_v31 = vsel %vm99_vm0, %v2457_v4, %v2300_v24  ;;  %v102_v32 = vsel %vm99_vm0, %v2450_v2, %v2299_v25  ;;  %2070 = vmatpush3.bf16.msk.msra.mxu0 %vm2501_vm1, %v2065_v22 }
  0x7e   :  { %v2071_v33 = vpack.c.bf16 %v103_v31, %v102_v32  ;;  %v107_v35 = vsel %vm99_vm0, %v2479_v9, %v2310_v29  ;;  %v106_v36 = vsel %vm99_vm0, %v2474_v8, %v2309_v30 }
  0x7f   :  { %v2083_v37 = vpack.c.bf16 %v107_v35, %v106_v36 }
  0x80   :  { %2073 = vmatprep.subr.msk.bf16.mxu0 %vm2501_vm1, %v2071_v33 }
  0x81   :  { %2076 = vmatpush3.bf16.msk.msra.mxu0 %vm2501_vm1, %v2071_v33 }
  0x82   :  { %2079 = vmatprep.subr.msk.bf16.mxu0 %vm2501_vm1, %v2077_v34 }
  0x85   :  { %2082 = vmatpush3.bf16.msk.msra.mxu0 %vm2501_vm1, %v2077_v34 }
  0x86   :  { %2085 = vmatprep.subr.msk.bf16.mxu0 %vm2501_vm1, %v2083_v37 }
  0x89   :  { %2088 = vmatpush3.bf16.msk.msra.mxu0 %vm2501_vm1, %v2083_v37 }
  0x8a   :  { %2091 = vmatprep.subr.msk.bf16.mxu0 %vm2532_vm3, %v2065_v22 }
  0x8d   :  { %2094 = vmatpush3.bf16.msk.msra.mxu0 %vm2532_vm3, %v2065_v22 }
  0x8e   :  { %2097 = vmatprep.subr.msk.bf16.mxu0 %vm2532_vm3, %v2071_v33 }
  0x91   :  { %2100 = vmatpush3.bf16.msk.msra.mxu0 %vm2532_vm3, %v2071_v33 }
  0x92   :  { %2103 = vmatprep.subr.msk.bf16.mxu0 %vm2532_vm3, %v2077_v34 }
  0x95   :  { %2106 = vmatpush3.bf16.msk.msra.mxu0 %vm2532_vm3, %v2077_v34 }
  0x96   :  { %2109 = vmatprep.subr.msk.bf16.mxu0 %vm2532_vm3, %v2083_v37 }
  0x99   :  { %2112 = vmatpush3.bf16.msk.msra.mxu0 %vm2532_vm3, %v2083_v37 }
  0x9c   :  { %1846 = vmatmul.mubr.f32.vlgmr.msra.gmra.mrb[0].mxu0 %v2557_v39 }
  0x9d   :  { %1848 = vmatprep.mubr.f32.mxu0 %v2562_v40 }
  0xa0   :  { %1849 = vmatmul.mubr.f32.gmra.mrb[2].mxu0 %v2569_v41 }
  0xa1   :  { %1851 = vmatprep.mubr.f32.mxu0 %v2574_v42 }
  0xa4   :  { %1852 = vmatmul.mubr.f32.gmra.mrb[4].mxu0 %v2581_v43 }
  0xa5   :  { %1955 = vmatprep.mubr.msk.f32.mxu0 %vm231_vm4, %v59_v44 }
 0x16f   :  { %v1847_v45 = vpop.f32.mrb[0].mxu0 }
 0x170   :  { %v190_v46 = vpop.f32.mrb[1].mxu0 }
 0x171   :  { %v2113_v47 = vpack.c.bf16 %v1847_v45, %v190_v46 }
 0x173   :  { %v1850_v48 = vpop.f32.mrb[2].mxu0  ;;  %2115 = vmatprep.subr.msk.bf16.mxu1 %vm2501_vm1, %v2113_v47 }
 0x174   :  { %v200_v49 = vpop.f32.mrb[3].mxu0  ;;  %2118 = vmatpush3.bf16.msk.msra.mxu1 %vm2501_vm1, %v2113_v47 }
 0x175   :  { %v2119_v50 = vpack.c.bf16 %v1850_v48, %v200_v49 }
 0x177   :  { %v1853_v51 = vpop.f32.mrb[4].mxu0  ;;  %2121 = vmatprep.subr.msk.bf16.mxu1 %vm2501_vm1, %v2119_v50 }
 0x178   :  { %v210_v52 = vpop.f32.mrb[5].mxu0  ;;  %2124 = vmatpush3.bf16.msk.msra.mxu1 %vm2501_vm1, %v2119_v50 }
 0x179   :  { %v2125_v53 = vpack.c.bf16 %v1853_v51, %v210_v52 }
 0x17b   :  { %2127 = vmatprep.subr.msk.bf16.mxu1 %vm2501_vm1, %v2125_v53 }
 0x17c   :  { %2130 = vmatpush3.bf16.msk.msra.mxu1 %vm2501_vm1, %v2125_v53 }
 0x17d   :  { %2133 = vmatprep.subr.msk.bf16.mxu1 %vm2532_vm3, %v2113_v47 }
 0x180   :  { %2136 = vmatpush3.bf16.msk.msra.mxu1 %vm2532_vm3, %v2113_v47 }
 0x181   :  { %2139 = vmatprep.subr.msk.bf16.mxu1 %vm2532_vm3, %v2119_v50 }
 0x184   :  { %2142 = vmatpush3.bf16.msk.msra.mxu1 %vm2532_vm3, %v2119_v50 }
 0x185   :  { %2145 = vmatprep.subr.msk.bf16.mxu1 %vm2532_vm3, %v2125_v53 }
 0x188   :  { %2148 = vmatpush3.bf16.msk.msra.mxu1 %vm2532_vm3, %v2125_v53 }
 0x18b   :  { %1879 = vmatmul.mubr.msk.f32.vlgmr.msra.gmra.mrb[0].mxu1 %vm231_vm4, %v2616_v54 }
 0x18c   :  { %1881 = vmatprep.mubr.msk.f32.mxu1 %vm231_vm4, %v2621_v55 }
 0x18f   :  { %1882 = vmatmul.mubr.msk.f32.gmra.mrb[2].mxu1 %vm231_vm4, %v2630_v56 }
 0x190   :  { %1884 = vmatprep.mubr.msk.f32.mxu1 %vm231_vm4, %v2635_v57 }
 0x193   :  { %1885 = vmatmul.mubr.msk.f32.gmra.mrb[4].mxu1 %vm231_vm4, %v2644_v58 }
 0x194   :  { %1887 = vmatprep.mubr.msk.f32.mxu1 %vm231_vm4, %v2649_v59 }
 0x197   :  { %1888 = vmatmul.mubr.msk.f32.gmra.mrb[6].mxu1 %vm231_vm4, %v2658_v60 }
 0x198   :  { %1922 = vmatprep.mubr.f32.mxu1 %v2492_v12 }
 0x25e   :  { %v1880_v61 = vpop.f32.mrb[0].mxu1 }
 0x25f   :  { %v322_v62 = vpop.f32.mrb[1].mxu1 }
 0x260   :  { %v2149_v63 = vpack.c.bf16 %v1880_v61, %v322_v62 }
 0x262   :  { %v1883_v3 = vpop.f32.mrb[2].mxu1  ;;  %2151 = vmatprep.subr.msk.bf16.mxu1 %vm2501_vm1, %v2149_v63 }
 0x263   :  { %v332_v7 = vpop.f32.mrb[3].mxu1  ;;  %2154 = vmatpush3.bf16.msk.msra.mxu1 %vm2501_vm1, %v2149_v63 }
 0x264   :  { %v2155_v10 = vpack.c.bf16 %v1883_v3, %v332_v7 }
 0x266   :  { %v1886_v11 = vpop.f32.mrb[4].mxu1  ;;  %2157 = vmatprep.subr.msk.bf16.mxu1 %vm2501_vm1, %v2155_v10 }
 0x267   :  { %v342_v13 = vpop.f32.mrb[5].mxu1  ;;  %2160 = vmatpush3.bf16.msk.msra.mxu1 %vm2501_vm1, %v2155_v10 }
 0x268   :  { %v2161_v12 = vpack.c.bf16 %v1886_v11, %v342_v13 }
 0x26a   :  { %v1889_v14 = vpop.f32.mrb[6].mxu1  ;;  %2163 = vmatprep.subr.msk.bf16.mxu1 %vm2501_vm1, %v2161_v12 }
 0x26b   :  { %v352_v15 = vpop.f32.mrb[7].mxu1  ;;  %2166 = vmatpush3.bf16.msk.msra.mxu1 %vm2501_vm1, %v2161_v12 }
 0x26c   :  { %v2167_v16 = vpack.c.bf16 %v1889_v14, %v352_v15 }
 0x26e   :  { %2169 = vmatprep.subr.msk.bf16.mxu1 %vm2501_vm1, %v2167_v16 }
 0x26f   :  { %2172 = vmatpush3.bf16.msk.msra.mxu1 %vm2501_vm1, %v2167_v16 }
 0x270   :  { %2175 = vmatprep.subr.msk.bf16.mxu1 %vm2532_vm3, %v2149_v63 }
 0x273   :  { %2178 = vmatpush3.bf16.msk.msra.mxu1 %vm2532_vm3, %v2149_v63 }
 0x274   :  { %2181 = vmatprep.subr.msk.bf16.mxu1 %vm2532_vm3, %v2155_v10 }
 0x277   :  { %2184 = vmatpush3.bf16.msk.msra.mxu1 %vm2532_vm3, %v2155_v10 }
 0x278   :  { %2187 = vmatprep.subr.msk.bf16.mxu1 %vm2532_vm3, %v2161_v12 }
 0x27b   :  { %2190 = vmatpush3.bf16.msk.msra.mxu1 %vm2532_vm3, %v2161_v12 }
 0x27c   :  { %2193 = vmatprep.subr.msk.bf16.mxu1 %vm2532_vm3, %v2167_v16 }
 0x27f   :  { %2196 = vmatpush3.bf16.msk.msra.mxu1 %vm2532_vm3, %v2167_v16 }
 0x282   :  { %1923 = vmatmul.mubr.f32.vlgmr.msra.gmra.mrb[8].mxu1 %v2557_v39 }
 0x283   :  { %1925 = vmatprep.mubr.f32.mxu1 %v2562_v40 }
 0x286   :  { %1926 = vmatmul.mubr.f32.gmra.mrb[10].mxu1 %v2569_v41 }
 0x287   :  { %1928 = vmatprep.mubr.f32.mxu1 %v2574_v42 }
 0x28a   :  { %1929 = vmatmul.mubr.f32.gmra.mrb[12].mxu1 %v2581_v43 }
 0x355   :  { %v2700_v17 = vpop.f32.mrb[8].mxu1 }
 0x356   :  { %v2702_v18 = vpop.f32.mrb[9].mxu1 }
 0x357   :  { %v2197_v19 = vpack.c.bf16 %v2700_v17, %v2702_v18 }
 0x359   :  { %v2706_v20 = vpop.f32.mrb[10].mxu1  ;;  %2199 = vmatprep.subr.msk.bf16.mxu0 %vm2501_vm1, %v2197_v19 }
 0x35a   :  { %v2710_v22 = vpop.f32.mrb[11].mxu1  ;;  %2202 = vmatpush3.bf16.msk.msra.mxu0 %vm2501_vm1, %v2197_v19 }
 0x35b   :  { %v2203_v23 = vpack.c.bf16 %v2706_v20, %v2710_v22 }
 0x35d   :  { %v2716_v24 = vpop.f32.mrb[12].mxu1  ;;  %2205 = vmatprep.subr.msk.bf16.mxu0 %vm2501_vm1, %v2203_v23 }
 0x35e   :  { %v2720_v25 = vpop.f32.mrb[13].mxu1  ;;  %2208 = vmatpush3.bf16.msk.msra.mxu0 %vm2501_vm1, %v2203_v23 }
 0x35f   :  { %v2209_v26 = vpack.c.bf16 %v2716_v24, %v2720_v25 }
 0x361   :  { %2211 = vmatprep.subr.msk.bf16.mxu0 %vm2501_vm1, %v2209_v26 }
 0x362   :  { %2214 = vmatpush3.bf16.msk.msra.mxu0 %vm2501_vm1, %v2209_v26 }
 0x363   :  { %2217 = vmatprep.subr.msk.bf16.mxu0 %vm2532_vm3, %v2197_v19 }
 0x366   :  { %2220 = vmatpush3.bf16.msk.msra.mxu0 %vm2532_vm3, %v2197_v19 }
 0x367   :  { %2223 = vmatprep.subr.msk.bf16.mxu0 %vm2532_vm3, %v2203_v23 }
 0x36a   :  { %2226 = vmatpush3.bf16.msk.msra.mxu0 %vm2532_vm3, %v2203_v23  ;;  %v2835_v23 = vld [vmem:[%s3363_s2] sm:$0xff] }
 0x36b   :  { %2229 = vmatprep.subr.msk.bf16.mxu0 %vm2532_vm3, %v2209_v26 }
 0x36e   :  { %2232 = vmatpush3.bf16.msk.msra.mxu0 %vm2532_vm3, %v2209_v26 }
 0x371   :  { %1956 = vmatmul.mubr.msk.f32.vlgmr.msra.gmra.mrb[6].mxu0 %vm231_vm4, %v2616_v54 }
 0x372   :  { %1958 = vmatprep.mubr.msk.f32.mxu0 %vm231_vm4, %v2621_v55 }
 0x375   :  { %1959 = vmatmul.mubr.msk.f32.gmra.mrb[8].mxu0 %vm231_vm4, %v2630_v56 }
 0x376   :  { %1961 = vmatprep.mubr.msk.f32.mxu0 %vm231_vm4, %v2635_v57 }
 0x379   :  { %1962 = vmatmul.mubr.msk.f32.gmra.mrb[10].mxu0 %vm231_vm4, %v2644_v58 }
 0x37a   :  { %1964 = vmatprep.mubr.msk.f32.mxu0 %vm231_vm4, %v2649_v59 }
 0x37d   :  { %1965 = vmatmul.mubr.msk.f32.gmra.mrb[12].mxu0 %vm231_vm4, %v2658_v60 }
 0x37e   :  { %1983 = vmatprep.mubr.msk.f32.mxu0 %vm799_vm5, %v2835_v23 }
 0x444   :  { %v2756_v21 = vpop.f32.mrb[6].mxu0 }
 0x445   :  { %689 = vrot.lane.b32.xlu1 %v2756_v21, %s2396_s5  ;;  %v2760_v27 = vpop.f32.mrb[7].mxu0 }
 0x446   :  { %687 = vrot.lane.b32.xlu0 %v2760_v27, %s2396_s5 }
 0x448   :  { %v2764_v28 = vpop.f32.mrb[8].mxu0 }
 0x449   :  { %693 = vrot.lane.b32.xlu1 %v2764_v28, %s2396_s5  ;;  %v2768_v29 = vpop.f32.mrb[9].mxu0 }
 0x44a   :  { %691 = vrot.lane.b32.xlu0 %v2768_v29, %s2396_s5 }
 0x44c   :  { %v2772_v30 = vpop.f32.mrb[10].mxu0 }
 0x44d   :  { %697 = vrot.lane.b32.xlu1 %v2772_v30, %s2396_s5  ;;  %v2776_v31 = vpop.f32.mrb[11].mxu0 }
 0x44e   :  { %695 = vrot.lane.b32.xlu0 %v2776_v31, %s2396_s5 }
 0x450   :  { %v2780_v32 = vpop.f32.mrb[12].mxu0 }
 0x451   :  { %701 = vrot.lane.b32.xlu1 %v2780_v32, %s2396_s5  ;;  %v2784_v33 = vpop.f32.mrb[13].mxu0 }
 0x452   :  { %699 = vrot.lane.b32.xlu0 %v2784_v33, %s2396_s5 }
 0x4b7   :  { %v690_v34 = vpop.permute.xlu1 %689 }
 0x4b8   :  { %v712_v35 = vadd.f32 %v2756_v21, %v690_v34  ;;  %v688_v36 = vpop.permute.xlu0 %687 }
 0x4b9   :  { %v711_v37 = vadd.f32 %v688_v36, %v2760_v27 }
 0x4ba   :  { %v2790_v38 = vmul.f32 0.5, %v712_v35 }
 0x4bb   :  { %v2792_v39 = vmul.f32 0.5, %v711_v37  ;;  %v694_v40 = vpop.permute.xlu1 %693 }
 0x4bc   :  { %v714_v41 = vadd.f32 %v2764_v28, %v694_v40  ;;  %v692_v42 = vpop.permute.xlu0 %691  ;;  %v728_v43 = vmul.f32 %v2790_v38, %v2790_v38 }
 0x4bd   :  { %v713_v44 = vadd.f32 %v692_v42, %v2768_v29  ;;  %v727_v45 = vmul.f32 %v2792_v39, %v2792_v39 }
 0x4be   :  { %v2800_v46 = vmul.f32 0.5, %v714_v41  ;;  %v738_v47 = vsel %vm99_vm0, %v728_v43, 0.0 }
 0x4bf   :  { %v2803_v48 = vmul.f32 0.5, %v713_v44  ;;  %v698_v49 = vpop.permute.xlu1 %697  ;;  %739 = vadd.xlane.f32.xlu1 %v738_v47  ;;  %v735_v50 = vsel %vm99_vm0, %v727_v45, 0.0 }
 0x4c0   :  { %v716_v51 = vadd.f32 %v2772_v30, %v698_v49  ;;  %v696_v52 = vpop.permute.xlu0 %695  ;;  %736 = vadd.xlane.f32.xlu0 %v735_v50  ;;  %v730_v53 = vmul.f32 %v2800_v46, %v2800_v46 }
 0x4c1   :  { %v715_v54 = vadd.f32 %v696_v52, %v2776_v31  ;;  %v729_v56 = vmul.f32 %v2803_v48, %v2803_v48 }
 0x4c2   :  { %v744_v55 = vsel %vm99_vm0, %v730_v53, 0.0  ;;  %v2813_v57 = vmul.f32 0.5, %v716_v51 }
 0x4c3   :  { %v2815_v58 = vmul.f32 0.5, %v715_v54  ;;  %v702_v59 = vpop.permute.xlu1 %701  ;;  %v741_v3 = vsel %vm99_vm0, %v729_v56, 0.0 }
 0x4c4   :  { %v718_v60 = vadd.f32 %v2780_v32, %v702_v59  ;;  %745 = vadd.xlane.f32.xlu0 %v744_v55  ;;  %v700_v61 = vpop.permute.xlu0 %699  ;;  %v732_v13 = vmul.f32 %v2813_v57, %v2813_v57 }
 0x4c5   :  { %v717_v62 = vadd.f32 %v700_v61, %v2784_v33  ;;  %v731_v63 = vmul.f32 %v2815_v58, %v2815_v58 }
 0x4c6   :  { %v2822_v7 = vmul.f32 0.5, %v718_v60  ;;  %v750_v14 = vsel %vm99_vm0, %v732_v13, 0.0 }
 0x4c7   :  { %v725_v10 = vmul.f32 0.5, %v717_v62  ;;  %v747_v11 = vsel %vm99_vm0, %v731_v63, 0.0 }
 0x4c8   :  { %748 = vadd.xlane.f32.xlu1 %v747_v11  ;;  %742 = vadd.xlane.f32.xlu0 %v741_v3  ;;  %v734_v16 = vmul.f32 %v2822_v7, %v2822_v7 }
 0x4c9   :  { %v733_v12 = vmul.f32 %v725_v10, %v725_v10 }
 0x4ca   :  { %v756_v19 = vsel %vm99_vm0, %v734_v16, 0.0 }
 0x4cb   :  { %v753_v15 = vsel %vm99_vm0, %v733_v12, 0.0 }
 0x4cc   :  { %751 = vadd.xlane.f32.xlu0 %v750_v14  ;;  %754 = vadd.xlane.f32.xlu1 %v753_v15 }
 0x4d0   :  { %757 = vadd.xlane.f32.xlu0 %v756_v19 }
 0x54c   :  { %v740_v26 = vpop.xlane.xlu1 %739 }
 0x54d   :  { %v760_v34 = vmax.f32 %v740_v26, 1e-24  ;;  %v737_v35 = vpop.xlane.xlu0 %736 }
 0x54e   :  { %v759_v36 = vmax.f32 %v737_v35, 1e-24 }
 0x54f   :  { %2311 = vrsqrt.f32 %v760_v34 }
 0x550   :  { %2313 = vrsqrt.f32 %v759_v36 }
 0x551   :  { %v746_v37 = vpop.xlane.xlu0 %745 }
 0x552   :  { %v762_v40 = vmax.f32 %v746_v37, 1e-24 }
 0x554   :  { %2315 = vrsqrt.f32 %v762_v40 }
 0x555   :  { %v749_v41 = vpop.xlane.xlu1 %748  ;;  %v743_v42 = vpop.xlane.xlu0 %742 }
 0x556   :  { %v763_v43 = vmax.f32 %v749_v41, 1e-24  ;;  %v761_v44 = vmax.f32 %v743_v42, 1e-24  ;;  %v44_v42 = vld [vmem:[%s3363_s2 + $0x28] sm:$0xff] }
 0x558   :  { %2317 = vrsqrt.f32 %v763_v43  ;;  %v45_v43 = vld [vmem:[%s3364_s3] sm:$0xff] }
 0x559   :  { %v2312_v45 = vpop.eup %2311  ;;  %2319 = vrsqrt.f32 %v761_v44  ;;  %v755_v47 = vpop.xlane.xlu1 %754  ;;  %2004 = vmatprep.mubr.msk.f32.mxu1 %vm913_vm6, %v45_v43 }
 0x55a   :  { %v752_v49 = vpop.xlane.xlu0 %751  ;;  %v2314_v50 = vpop.eup %2313  ;;  %v765_v51 = vmax.f32 %v755_v47, 1e-24  ;;  %v776_v53 = vmul.f32 %v2312_v45, %v2790_v38 }
 0x55b   :  { %v764_v52 = vmax.f32 %v752_v49, 1e-24  ;;  %v775_v54 = vmul.f32 %v2314_v50, %v2792_v39 }
 0x55c   :  { %2321 = vrsqrt.f32 %v765_v51  ;;  %v784_v55 = vmul.f32 0.36, %v776_v53 }
 0x55d   :  { %2323 = vrsqrt.f32 %v764_v52  ;;  %v783_v59 = vmul.f32 0.36, %v775_v54 }
 0x55e   :  { %v758_v56 = vpop.xlane.xlu0 %757  ;;  %v2316_v60 = vpop.eup %2315  ;;  %v2842_v62 = vadd.f32 %v784_v55, %v2445_v1  ;;  %v2936_v55 = vld [vmem:[%s3364_s3 + $0x8] sm:$0xff] }
 0x55f   :  { %v766_v61 = vmax.f32 %v758_v56, 1e-24  ;;  %v2845_v63 = vadd.f32 %v783_v59, %v2440_v0  ;;  %v778_v3 = vmul.f32 %v2316_v60, %v2800_v46  ;;  %v2941_v56 = vld [vmem:[%s3364_s3 + $0x10] sm:$0xff]  ;;  %v2950_v59 = vld [vmem:[%s3364_s3 + $0x18] sm:$0xff]  ;;  %v2955_v60 = vld [vmem:[%s3364_s3 + $0x20] sm:$0xff] }
 0x561   :  { %2325 = vrsqrt.f32 %v766_v61  ;;  %v2233_v38 = vpack.c.bf16 %v2842_v62, %v2845_v63  ;;  %v786_v12 = vmul.f32 0.36, %v778_v3  ;;  %v2964_v61 = vld [vmem:[%s3364_s3 + $0x28] sm:$0xff]  ;;  %v2969_v3 = vld [vmem:[%s3364_s3 + $0x30] sm:$0xff] }
 0x562   :  { %v2318_v39 = vpop.eup %2317 }
 0x563   :  { %v2320_v11 = vpop.eup %2319  ;;  %2234 = vmatprep.subr.bf16.mxu0 %v2233_v38  ;;  %v779_v14 = vmul.f32 %v2318_v39, %v2815_v58  ;;  %v2856_v46 = vadd.f32 %v786_v12, %v2457_v4 }
 0x564   :  { %2236 = vmatpush3.bf16.msra.mxu0 %v2233_v38  ;;  %v777_v13 = vmul.f32 %v2320_v11, %v2803_v48  ;;  %v2978_v38 = vld [vmem:[%s3364_s3 + $0x38] sm:$0xff] }
 0x565   :  { %v787_v34 = vmul.f32 0.36, %v779_v14 }
 0x566   :  { %v2322_v1 = vpop.eup %2321  ;;  %v785_v15 = vmul.f32 0.36, %v777_v13 }
 0x567   :  { %v2324_v16 = vpop.eup %2323  ;;  %v781_v0 = vmul.f32 %v2322_v1, %v725_v10  ;;  %v2863_v10 = vadd.f32 %v787_v34, %v2462_v5 }
 0x568   :  { %v2853_v19 = vadd.f32 %v785_v15, %v2450_v2  ;;  %v780_v26 = vmul.f32 %v2324_v16, %v2813_v57 }
 0x569   :  { %v789_v37 = vmul.f32 0.36, %v781_v0 }
 0x56a   :  { %v2237_v48 = vpack.c.bf16 %v2856_v46, %v2853_v19  ;;  %v788_v36 = vmul.f32 0.36, %v780_v26 }
 0x56b   :  { %v2326_v35 = vpop.eup %2325  ;;  %v2871_v40 = vadd.f32 %v789_v37, %v2474_v8  ;;  %v2886_v8 = vld [vmem:[%s3363_s2 + $0x10] sm:$0xff] }
 0x56c   :  { %v782_v58 = vmul.f32 %v2326_v35, %v2822_v7  ;;  %2238 = vmatprep.subr.bf16.mxu0 %v2237_v48  ;;  %v2866_v2 = vadd.f32 %v788_v36, %v2467_v6  ;;  %v2881_v6 = vld [vmem:[%s3363_s2 + $0x8] sm:$0xff]  ;;  %v2900_v7 = vld [vmem:[%s3363_s2 + $0x20] sm:$0xff] }
 0x56d   :  { %2240 = vmatpush3.bf16.msra.mxu0 %v2237_v48  ;;  %3374 = vst [vmem:[#allocation2_spill] sm:$0xff] %v2871_v40 }
 0x56e   :  { %v790_v4 = vmul.f32 0.36, %v782_v58  ;;  %v2241_v57 = vpack.c.bf16 %v2866_v2, %v2863_v10 }
 0x570   :  { %v2874_v41 = vadd.f32 %v790_v4, %v2479_v9  ;;  %2242 = vmatprep.subr.bf16.mxu0 %v2241_v57  ;;  %v2895_v9 = vld [vmem:[%s3363_s2 + $0x18] sm:$0xff] }
 0x571   :  { %2244 = vmatpush3.bf16.msra.mxu0 %v2241_v57 }
 0x572   :  { %v2245_v5 = vpack.c.bf16 %v2874_v41, %v2871_v40 }
 0x574   :  { %2246 = vmatprep.subr.bf16.mxu0 %v2245_v5 }
 0x575   :  { %2248 = vmatpush3.bf16.msra.mxu0 %v2245_v5 }
 0x578   :  { %1984 = vmatmul.mubr.msk.f32.vlgmr.msra.gmra.mrb[14].mxu0 %vm799_vm5, %v2881_v6 }
 0x579   :  { %1986 = vmatprep.mubr.msk.f32.mxu0 %vm799_vm5, %v2886_v8 }
 0x57c   :  { %1987 = vmatmul.mubr.msk.f32.gmra.mrb[16].mxu0 %vm799_vm5, %v2895_v9 }
 0x57d   :  { %1989 = vmatprep.mubr.msk.f32.mxu0 %vm799_vm5, %v2900_v7 }
 0x580   :  { %1990 = vmatmul.mubr.msk.f32.gmra.mrb[18].mxu0 %vm799_vm5, %v44_v42 }
 0x581   :  { %2053 = vmatprep.mubr.msk.f32.mxu0 %vm913_vm6, %v45_v43 }
 0x64b   :  { %v2915_v44 = vpop.f32.mrb[14].mxu0 }
 0x64c   :  { %v2917_v45 = vpop.f32.mrb[15].mxu0 }
 0x64d   :  { %v2249_v47 = vpack.c.bf16 %v2915_v44, %v2917_v45 }
 0x64f   :  { %v2921_v49 = vpop.f32.mrb[16].mxu0  ;;  %2250 = vmatprep.subr.bf16.mxu1 %v2249_v47 }
 0x650   :  { %v2923_v50 = vpop.f32.mrb[17].mxu0  ;;  %2252 = vmatpush3.bf16.msra.mxu1 %v2249_v47 }
 0x651   :  { %v2253_v51 = vpack.c.bf16 %v2921_v49, %v2923_v50 }
 0x653   :  { %v2927_v52 = vpop.f32.mrb[18].mxu0  ;;  %2254 = vmatprep.subr.bf16.mxu1 %v2253_v51 }
 0x654   :  { %v2929_v53 = vpop.f32.mrb[19].mxu0  ;;  %2256 = vmatpush3.bf16.msra.mxu1 %v2253_v51 }
 0x655   :  { %v2257_v54 = vpack.c.bf16 %v2927_v52, %v2929_v53 }
 0x657   :  { %2258 = vmatprep.subr.bf16.mxu1 %v2257_v54 }
 0x658   :  { %2260 = vmatpush3.bf16.msra.mxu1 %v2257_v54 }
 0x65b   :  { %2005 = vmatmul.mubr.msk.f32.vlgmr.msra.gmra.mrb[14].mxu1 %vm913_vm6, %v2936_v55 }
 0x65c   :  { %2007 = vmatprep.mubr.msk.f32.mxu1 %vm913_vm6, %v2941_v56 }
 0x65f   :  { %2008 = vmatmul.mubr.msk.f32.gmra.mrb[16].mxu1 %vm913_vm6, %v2950_v59 }
 0x660   :  { %2010 = vmatprep.mubr.msk.f32.mxu1 %vm913_vm6, %v2955_v60 }
 0x663   :  { %2011 = vmatmul.mubr.msk.f32.gmra.mrb[18].mxu1 %vm913_vm6, %v2964_v61 }
 0x664   :  { %2013 = vmatprep.mubr.msk.f32.mxu1 %vm913_vm6, %v2969_v3 }
 0x667   :  { %2014 = vmatmul.mubr.msk.f32.gmra.mrb[20].mxu1 %vm913_vm6, %v2978_v38 }
 0x668   :  { %2032 = vmatprep.mubr.msk.f32.mxu1 %vm799_vm5, %v2835_v23 }
 0x72e   :  { %v2984_v39 = vpop.f32.mrb[14].mxu1 }
 0x72f   :  { %v2986_v11 = vpop.f32.mrb[15].mxu1 }
 0x730   :  { %v2261_v13 = vpack.c.bf16 %v2984_v39, %v2986_v11 }
 0x732   :  { %v2990_v12 = vpop.f32.mrb[16].mxu1  ;;  %2262 = vmatprep.subr.bf16.mxu1 %v2261_v13 }
 0x733   :  { %v2992_v14 = vpop.f32.mrb[17].mxu1  ;;  %2264 = vmatpush3.bf16.msra.mxu1 %v2261_v13 }
 0x734   :  { %v2265_v1 = vpack.c.bf16 %v2990_v12, %v2992_v14 }
 0x736   :  { %v2996_v15 = vpop.f32.mrb[18].mxu1  ;;  %2266 = vmatprep.subr.bf16.mxu1 %v2265_v1 }
 0x737   :  { %v2998_v23 = vpop.f32.mrb[19].mxu1  ;;  %2268 = vmatpush3.bf16.msra.mxu1 %v2265_v1 }
 0x738   :  { %v2269_v16 = vpack.c.bf16 %v2996_v15, %v2998_v23 }
 0x73a   :  { %v3002_v0 = vpop.f32.mrb[20].mxu1  ;;  %2270 = vmatprep.subr.bf16.mxu1 %v2269_v16 }
 0x73b   :  { %v3004_v26 = vpop.f32.mrb[21].mxu1  ;;  %2272 = vmatpush3.bf16.msra.mxu1 %v2269_v16 }
 0x73c   :  { %3375 = vst [vmem:[#allocation3_spill] sm:$0xff] %v3004_v26  ;;  %v2273_v34 = vpack.c.bf16 %v3002_v0, %v3004_v26 }
 0x73e   :  { %2274 = vmatprep.subr.bf16.mxu1 %v2273_v34 }
 0x73f   :  { %2276 = vmatpush3.bf16.msra.mxu1 %v2273_v34 }
 0x742   :  { %2033 = vmatmul.mubr.msk.f32.vlgmr.msra.gmra.mrb[22].mxu1 %vm799_vm5, %v2881_v6 }
 0x743   :  { %2035 = vmatprep.mubr.msk.f32.mxu1 %vm799_vm5, %v2886_v8 }
 0x746   :  { %2036 = vmatmul.mubr.msk.f32.gmra.mrb[24].mxu1 %vm799_vm5, %v2895_v9 }
 0x747   :  { %2038 = vmatprep.mubr.msk.f32.mxu1 %vm799_vm5, %v2900_v7 }
 0x74a   :  { %2039 = vmatmul.mubr.msk.f32.gmra.mrb[26].mxu1 %vm799_vm5, %v44_v42 }
 0x815   :  { %v2034_v35 = vpop.f32.mrb[22].mxu1 }
 0x816   :  { %v1123_v48 = vpop.f32.mrb[23].mxu1  ;;  %v1155_v36 = vsel %vm99_vm0, %v2034_v35, -inf }
 0x817   :  { %1156 = vmax.xlane.f32.xlu0 %v1155_v36  ;;  %v1152_v58 = vsel %vm99_vm0, %v1123_v48, -inf }
 0x818   :  { %1153 = vmax.xlane.f32.xlu1 %v1152_v58 }
 0x819   :  { %v2037_v37 = vpop.f32.mrb[24].mxu1 }
 0x81a   :  { %v1133_v4 = vpop.f32.mrb[25].mxu1  ;;  %v1161_v57 = vsel %vm99_vm0, %v2037_v37, -inf }
 0x81b   :  { %1162 = vmax.xlane.f32.xlu0 %v1161_v57  ;;  %v1158_v5 = vsel %vm99_vm0, %v1133_v4, -inf }
 0x81c   :  { %1159 = vmax.xlane.f32.xlu1 %v1158_v5 }
 0x81d   :  { %v2040_v6 = vpop.f32.mrb[26].mxu1 }
 0x81e   :  { %v1143_v8 = vpop.f32.mrb[27].mxu1  ;;  %v1167_v9 = vsel %vm99_vm0, %v2040_v6, -inf }
 0x81f   :  { %1168 = vmax.xlane.f32.xlu0 %v1167_v9  ;;  %v1164_v7 = vsel %vm99_vm0, %v1143_v8, -inf }
 0x820   :  { %1165 = vmax.xlane.f32.xlu1 %v1164_v7 }
 0x8a4   :  { %v1157_v42 = vpop.xlane.xlu0 %1156 }
 0x8a5   :  { %v1171_v43 = vsub.f32 %v2034_v35, %v1157_v42  ;;  %v1154_v47 = vpop.xlane.xlu1 %1153 }
 0x8a6   :  { %v1170_v51 = vsub.f32 %v1123_v48, %v1154_v47 }
 0x8a7   :  { %v1178_v54 = vmul.f32 1.442695, %v1171_v43 }
 0x8a8   :  { %v1176_v13 = vmul.f32 1.442695, %v1170_v51  ;;  %v1163_v1 = vpop.xlane.xlu0 %1162 }
 0x8a9   :  { %2327 = vpow2.f32 %v1178_v54  ;;  %v1173_v16 = vsub.f32 %v2037_v37, %v1163_v1  ;;  %v1160_v34 = vpop.xlane.xlu1 %1159 }
 0x8aa   :  { %2329 = vpow2.f32 %v1176_v13  ;;  %v1172_v36 = vsub.f32 %v1133_v4, %v1160_v34 }
 0x8ab   :  { %v1182_v58 = vmul.f32 1.442695, %v1173_v16 }
 0x8ac   :  { %v1180_v57 = vmul.f32 1.442695, %v1172_v36  ;;  %v1169_v5 = vpop.xlane.xlu0 %1168 }
 0x8ad   :  { %2331 = vpow2.f32 %v1182_v58  ;;  %v1175_v9 = vsub.f32 %v2040_v6, %v1169_v5  ;;  %v1166_v26 = vpop.xlane.xlu1 %1165 }
 0x8ae   :  { %2333 = vpow2.f32 %v1180_v57  ;;  %v1174_v7 = vsub.f32 %v1143_v8, %v1166_v26 }
 0x8af   :  { %v1186_v40 = vmul.f32 1.442695, %v1175_v9 }
 0x8b0   :  { %v1184_v35 = vmul.f32 1.442695, %v1174_v7 }
 0x8b1   :  { %2335 = vpow2.f32 %v1186_v40 }
 0x8b2   :  { %2337 = vpow2.f32 %v1184_v35 }
 0x8b3   :  { %v2328_v48 = vpop.eup %2327 }
 0x8b4   :  { %v2330_v42 = vpop.eup %2329  ;;  %v1191_v43 = vsel %vm99_vm0, %v2328_v48, 0.0 }
 0x8b5   :  { %1192 = vadd.xlane.f32.xlu0 %v1191_v43  ;;  %v1188_v37 = vsel %vm99_vm0, %v2330_v42, 0.0 }
 0x8b6   :  { %1189 = vadd.xlane.f32.xlu1 %v1188_v37 }
 0x8b7   :  { %v2332_v4 = vpop.eup %2331 }
 0x8b8   :  { %v2334_v47 = vpop.eup %2333  ;;  %v1197_v51 = vsel %vm99_vm0, %v2332_v4, 0.0 }
 0x8b9   :  { %1198 = vadd.xlane.f32.xlu0 %v1197_v51  ;;  %v1194_v6 = vsel %vm99_vm0, %v2334_v47, 0.0 }
 0x8ba   :  { %1195 = vadd.xlane.f32.xlu1 %v1194_v6 }
 0x8bb   :  { %v2336_v26 = vpop.eup %2335 }
 0x8bc   :  { %v2338_v8 = vpop.eup %2337  ;;  %v1203_v40 = vsel %vm99_vm0, %v2336_v26, 0.0 }
 0x8bd   :  { %1204 = vadd.xlane.f32.xlu0 %v1203_v40  ;;  %v1200_v54 = vsel %vm99_vm0, %v2338_v8, 0.0 }
 0x8be   :  { %1201 = vadd.xlane.f32.xlu1 %v1200_v54 }
 0x8cf   :  { %595 = vrot.lane.b32.xlu1 %v2702_v18, %s2396_s5 }
 0x8d3   :  { %597 = vrot.lane.b32.xlu0 %v2700_v17, %s2396_s5  ;;  %599 = vrot.lane.b32.xlu1 %v2710_v22, %s2396_s5 }
 0x8d7   :  { %603 = vrot.lane.b32.xlu0 %v2720_v25, %s2396_s5  ;;  %601 = vrot.lane.b32.xlu1 %v2706_v20, %s2396_s5 }
 0x8db   :  { %605 = vrot.lane.b32.xlu1 %v2716_v24, %s2396_s5 }
 0x942   :  { %v1193_v13 = vpop.xlane.xlu0 %1192 }
 0x943   :  { %2339 = vrcp.f32 %v1193_v13  ;;  %v1190_v1 = vpop.xlane.xlu1 %1189 }
 0x944   :  { %2341 = vrcp.f32 %v1190_v1 }
 0x946   :  { %v1199_v16 = vpop.xlane.xlu0 %1198 }
 0x947   :  { %2343 = vrcp.f32 %v1199_v16  ;;  %v1196_v34 = vpop.xlane.xlu1 %1195 }
 0x948   :  { %2345 = vrcp.f32 %v1196_v34 }
 0x94a   :  { %v1205_v36 = vpop.xlane.xlu0 %1204 }
 0x94b   :  { %2347 = vrcp.f32 %v1205_v36  ;;  %v1202_v58 = vpop.xlane.xlu1 %1201 }
 0x94c   :  { %2349 = vrcp.f32 %v1202_v58 }
 0x94d   :  { %v2340_v57 = vpop.eup %2339 }
 0x94e   :  { %v2342_v5 = vpop.eup %2341  ;;  %v598_v9 = vpop.permute.xlu0 %597  ;;  %v3041_v7 = vmul.f32 %v2340_v57, %v2328_v48 }
 0x94f   :  { %v614_v35 = vadd.f32 %v2700_v17, %v598_v9  ;;  %v596_v43 = vpop.permute.xlu1 %595  ;;  %v3044_v37 = vmul.f32 %v2342_v5, %v2330_v42 }
 0x950   :  { %v613_v51 = vadd.f32 %v596_v43, %v2702_v18 }
 0x951   :  { %v2344_v6 = vpop.eup %2343  ;;  %v3047_v40 = vmul.f32 0.5, %v614_v35  ;;  %v2277_v54 = vpack.c.bf16 %v3041_v7, %v3044_v37 }
 0x952   :  { %v2346_v13 = vpop.eup %2345  ;;  %v3051_v1 = vmul.f32 0.5, %v613_v51  ;;  %v3053_v16 = vmul.f32 %v2344_v6, %v2332_v4 }
 0x953   :  { %2278 = vmatprep.subr.bf16.mxu0 %v2277_v54  ;;  %v600_v48 = vpop.permute.xlu1 %599  ;;  %v626_v34 = vmul.f32 %v3047_v40, %v3047_v40  ;;  %v3057_v42 = vmul.f32 %v2346_v13, %v2334_v47 }
 0x954   :  { %v615_v36 = vadd.f32 %v600_v48, %v2710_v22  ;;  %2280 = vmatpush3.bf16.msra.mxu0 %v2277_v54  ;;  %v625_v58 = vmul.f32 %v3051_v1, %v3051_v1 }
 0x955   :  { %v2348_v57 = vpop.eup %2347  ;;  %v634_v5 = vsel %vm99_vm0, %v626_v34, 0.0  ;;  %v2281_v4 = vpack.c.bf16 %v3053_v16, %v3057_v42 }
 0x956   :  { %v2350_v9 = vpop.eup %2349  ;;  %v3065_v35 = vmul.f32 0.5, %v615_v36  ;;  %635 = vadd.xlane.f32.xlu1 %v634_v5  ;;  %v631_v43 = vsel %vm99_vm0, %v625_v58, 0.0  ;;  %v3068_v47 = vmul.f32 %v2348_v57, %v2336_v26  ;;  %v604_v26 = vpop.permute.xlu0 %603 }
 0x957   :  { %2282 = vmatprep.subr.bf16.mxu0 %v2281_v4  ;;  %632 = vadd.xlane.f32.xlu0 %v631_v43  ;;  %v3070_v51 = vmul.f32 %v2350_v9, %v2338_v8 }
 0x958   :  { %2284 = vmatpush3.bf16.msra.mxu0 %v2281_v4  ;;  %v627_v6 = vmul.f32 %v3065_v35, %v3065_v35 }
 0x959   :  { %v2285_v54 = vpack.c.bf16 %v3068_v47, %v3070_v51 }
 0x95a   :  { %v637_v13 = vsel %vm99_vm0, %v627_v6, 0.0 }
 0x95b   :  { %2286 = vmatprep.subr.bf16.mxu0 %v2285_v54  ;;  %638 = vadd.xlane.f32.xlu0 %v637_v13 }
 0x95c   :  { %2288 = vmatpush3.bf16.msra.mxu0 %v2285_v54 }
 0x95f   :  { %2054 = vmatmul.mubr.msk.f32.vlgmr.msra.gmra.mrb[20].mxu0 %vm913_vm6, %v2936_v55  ;;  %v602_v55 = vpop.permute.xlu1 %601 }
 0x960   :  { %2056 = vmatprep.mubr.msk.f32.mxu0 %vm913_vm6, %v2941_v56 }
 0x963   :  { %2057 = vmatmul.mubr.msk.f32.gmra.mrb[22].mxu0 %vm913_vm6, %v2950_v59  ;;  %v606_v58 = vpop.permute.xlu1 %605 }
 0x964   :  { %2059 = vmatprep.mubr.msk.f32.mxu0 %vm913_vm6, %v2955_v60  ;;  %v617_v60 = vadd.f32 %v604_v26, %v2720_v25  ;;  %v618_v9 = vadd.f32 %v2716_v24, %v606_v58 }
 0x966   :  { %v3107_v36 = vmul.f32 0.5, %v617_v60 }
 0x967   :  { %2060 = vmatmul.mubr.msk.f32.gmra.mrb[24].mxu0 %vm913_vm6, %v2964_v61 }
 0x968   :  { %2062 = vmatprep.mubr.msk.f32.mxu0 %vm913_vm6, %v2969_v3  ;;  %v629_v13 = vmul.f32 %v3107_v36, %v3107_v36 }
 0x96b   :  { %2063 = vmatmul.mubr.msk.f32.gmra.mrb[26].mxu0 %vm913_vm6, %v2978_v38  ;;  %v616_v38 = vadd.f32 %v2706_v20, %v602_v55  ;;  %v3126_v55 = vmul.f32 0.5, %v618_v9 }
 0x96d   :  { %v3113_v4 = vmul.f32 0.5, %v616_v38  ;;  %v643_v38 = vsel %vm99_vm0, %v629_v13, 0.0  ;;  %v630_v58 = vmul.f32 %v3126_v55, %v3126_v55 }
 0x96f   :  { %v628_v60 = vmul.f32 %v3113_v4, %v3113_v4 }
 0xa32   :  { %v3091_v8 = vpop.f32.mrb[20].mxu0 }
 0xa33   :  { %v3093_v56 = vpop.f32.mrb[21].mxu0  ;;  %v1326_v59 = vsel %vm99_vm0, %v3091_v8, -inf }
 0xa34   :  { %1327 = vmax.xlane.f32.xlu0 %v1326_v59  ;;  %v1323_v61 = vsel %vm99_vm0, %v3093_v56, -inf }
 0xa35   :  { %1324 = vmax.xlane.f32.xlu1 %v1323_v61 }
 0xa36   :  { %v3100_v3 = vpop.f32.mrb[22].mxu0 }
 0xa37   :  { %v3103_v48 = vpop.f32.mrb[23].mxu0  ;;  %v1332_v34 = vsel %vm99_vm0, %v3100_v3, -inf }
 0xa38   :  { %1333 = vmax.xlane.f32.xlu0 %v1332_v34  ;;  %v1329_v57 = vsel %vm99_vm0, %v3103_v48, -inf  ;;  %v640_v34 = vsel %vm99_vm0, %v628_v60, 0.0 }
 0xa39   :  { %1330 = vmax.xlane.f32.xlu1 %v1329_v57  ;;  %v646_v57 = vsel %vm99_vm0, %v630_v58, 0.0 }
 0xa3a   :  { %v3111_v5 = vpop.f32.mrb[24].mxu0 }
 0xa3b   :  { %v3116_v43 = vpop.f32.mrb[25].mxu0  ;;  %v1338_v6 = vsel %vm99_vm0, %v3111_v5, -inf }
 0xa3c   :  { %1339 = vmax.xlane.f32.xlu0 %v1338_v6  ;;  %v1335_v54 = vsel %vm99_vm0, %v3116_v43, -inf }
 0xa3d   :  { %1336 = vmax.xlane.f32.xlu1 %v1335_v54 }
 0xa3e   :  { %v3124_v26 = vpop.f32.mrb[26].mxu0 }
 0xa3f   :  { %v1344_v59 = vsel %vm99_vm0, %v3124_v26, -inf  ;;  %v3132_v61 = vpop.f32.mrb[27].mxu0 }
 0xa40   :  { %1345 = vmax.xlane.f32.xlu0 %v1344_v59  ;;  %v1341_v9 = vsel %vm99_vm0, %v3132_v61, -inf }
 0xa41   :  { %644 = vadd.xlane.f32.xlu1 %v643_v38 }
 0xa44   :  { %641 = vadd.xlane.f32.xlu0 %v640_v34 }
 0xa48   :  { %647 = vadd.xlane.f32.xlu0 %v646_v57 }
 0xa52   :  { %1439 = vrot.lane.b32.xlu1 %v2702_v18, %s2395_s17 }
 0xa5e   :  { %1441 = vrot.lane.b32.xlu0 %v2700_v17, %s2395_s17  ;;  %v633_v17 = vpop.xlane.xlu0 %632 }
 0xa5f   :  { %v649_v18 = vmax.f32 %v633_v17, 1e-24 }
 0xa61   :  { %2351 = vrsqrt.f32 %v649_v18 }
 0xa62   :  { %1447 = vrot.lane.b32.xlu0 %v2720_v25, %s2395_s17  ;;  %v636_v25 = vpop.xlane.xlu1 %635 }
 0xa66   :  { %1481 = vrot.lane.b32.xlu0 %v2760_v27, %s2395_s17 }
 0xa6a   :  { %1485 = vrot.lane.b32.xlu0 %v2768_v29, %s2395_s17  ;;  %v3166_v29 = vpop.xlane.xlu0 %638 }
 0xa6b   :  { %v2352_v27 = vpop.eup %2351 }
 0xa6e   :  { %1489 = vrot.lane.b32.xlu0 %v2776_v31, %s2395_s17 }
 0xa76   :  { %1342 = vmax.xlane.f32.xlu1 %v1341_v9 }
 0xa87   :  { %1443 = vrot.lane.b32.xlu1 %v2710_v22, %s2395_s17  ;;  %v650_v22 = vmax.f32 %v636_v25, 1e-24 }
 0xa89   :  { %2353 = vrsqrt.f32 %v650_v22 }
 0xa8b   :  { %1445 = vrot.lane.b32.xlu1 %v2706_v20, %s2395_s17  ;;  %v661_v20 = vmul.f32 %v2352_v27, %v3051_v1 }
 0xa8d   :  { %v667_v31 = vmul.f32 0.36, %v661_v20 }
 0xa8f   :  { %1449 = vrot.lane.b32.xlu1 %v2716_v24, %s2395_s17 }
 0xa93   :  { %1483 = vrot.lane.b32.xlu1 %v2756_v21, %s2395_s17  ;;  %v2354_v24 = vpop.eup %2353 }
 0xa94   :  { %v662_v13 = vmul.f32 %v2354_v24, %v3047_v40  ;;  %v26_v40 = vld [vmem:[%s3365_s0 + $0x8] sm:$0xff] }
 0xa96   :  { %v668_v57 = vmul.f32 0.36, %v662_v13 }
 0xa97   :  { %1487 = vrot.lane.b32.xlu1 %v2764_v28, %s2395_s17 }
 0xa98   :  { %v674_v20 = vadd.f32 %v668_v57, %v26_v40 }
 0xa9b   :  { %1491 = vrot.lane.b32.xlu1 %v2772_v30, %s2395_s17  ;;  %v25_v30 = vld [vmem:[%s3365_s0] sm:$0xff] }
 0xa9c   :  { %v673_v1 = vadd.f32 %v667_v31, %v25_v30 }
 0xa9e   :  { %v1043_v25 = vadd.f32 %v2917_v45, %v673_v1 }
 0xaa0   :  { %v1411_v31 = vadd.f32 %v3044_v37, %v1043_v25 }
 0xac1   :  { %v1328_v21 = vpop.xlane.xlu0 %1327 }
 0xac2   :  { %v1348_v6 = vsub.f32 %v3091_v8, %v1328_v21  ;;  %v1325_v28 = vpop.xlane.xlu1 %1324 }
 0xac3   :  { %v1347_v54 = vsub.f32 %v3093_v56, %v1325_v28 }
 0xac4   :  { %v1357_v59 = vmul.f32 1.442695, %v1348_v6 }
 0xac5   :  { %v1355_v60 = vmul.f32 1.442695, %v1347_v54  ;;  %v1334_v38 = vpop.xlane.xlu0 %1333 }
 0xac6   :  { %2355 = vpow2.f32 %v1357_v59  ;;  %v1350_v34 = vsub.f32 %v3100_v3, %v1334_v38  ;;  %v1331_v58 = vpop.xlane.xlu1 %1330  ;;  %v1425_v59 = vmul.f32 0.33333334, %v1411_v31  ;;  %v29_v31 = vld [vmem:[%s3365_s0 + $0x20] sm:$0xff] }
 0xac7   :  { %2357 = vpow2.f32 %v1355_v60  ;;  %v1349_v8 = vsub.f32 %v3103_v48, %v1331_v58 }
 0xac8   :  { %v1361_v9 = vmul.f32 1.442695, %v1350_v34 }
 0xac9   :  { %v1359_v17 = vmul.f32 1.442695, %v1349_v8  ;;  %v1340_v18 = vpop.xlane.xlu0 %1339 }
 0xaca   :  { %2359 = vpow2.f32 %v1361_v9  ;;  %v1352_v56 = vsub.f32 %v3111_v5, %v1340_v18  ;;  %v1337_v22 = vpop.xlane.xlu1 %1336  ;;  %v1044_v5 = vadd.f32 %v2915_v44, %v674_v20 }
 0xacb   :  { %2361 = vpow2.f32 %v1359_v17  ;;  %v1351_v3 = vsub.f32 %v3116_v43, %v1337_v22 }
 0xacc   :  { %v1365_v27 = vmul.f32 1.442695, %v1352_v56  ;;  %v1412_v1 = vadd.f32 %v3041_v7, %v1044_v5 }
 0xacd   :  { %v1363_v48 = vmul.f32 1.442695, %v1351_v3  ;;  %v1346_v24 = vpop.xlane.xlu0 %1345 }
 0xace   :  { %2363 = vpow2.f32 %v1365_v27  ;;  %v1354_v45 = vsub.f32 %v3124_v26, %v1346_v24  ;;  %v645_v21 = vpop.xlane.xlu1 %644  ;;  %v1426_v7 = vmul.f32 0.33333334, %v1412_v1 }
 0xacf   :  { %2365 = vpow2.f32 %v1363_v48  ;;  %v653_v6 = vmax.f32 %v645_v21, 1e-24 }
 0xad0   :  { %v3184_v28 = vpop.eup %2355  ;;  %v1369_v30 = vmul.f32 1.442695, %v1354_v45 }
 0xad1   :  { %v3187_v54 = vpop.eup %2357  ;;  %2367 = vrsqrt.f32 %v653_v6  ;;  %v642_v43 = vpop.xlane.xlu0 %641  ;;  %v1374_v13 = vsel %vm99_vm0, %v3184_v28, 0.0 }
 0xad2   :  { %2369 = vpow2.f32 %v1369_v30  ;;  %1375 = vadd.xlane.f32.xlu0 %v1374_v13  ;;  %v1440_v37 = vpop.permute.xlu1 %1439  ;;  %v1371_v26 = vsel %vm99_vm0, %v3187_v54, 0.0  ;;  %v651_v30 = vmax.f32 %v3166_v29, 1e-24  ;;  %v652_v13 = vmax.f32 %v642_v43, 1e-24 }
 0xad3   :  { %v1457_v60 = vsel %vm99_vm0, %v1425_v59, %v1440_v37  ;;  %1372 = vadd.xlane.f32.xlu1 %v1371_v26 }
 0xad4   :  { %v3194_v38 = vpop.eup %2359  ;;  %v1463_v44 = vsel %vm799_vm5, %v1457_v60, %v1440_v37  ;;  %2371 = vrsqrt.f32 %v651_v30 }
 0xad5   :  { %v3198_v34 = vpop.eup %2361  ;;  %v1469_v58 = vsel %vm231_vm4, %v1463_v44, 0.0  ;;  %v648_v8 = vpop.xlane.xlu0 %647  ;;  %v1380_v57 = vsel %vm99_vm0, %v3194_v38, 0.0  ;;  %2373 = vrsqrt.f32 %v652_v13 }
 0xad6   :  { %1475 = vst [vmem:[%s3366_s6] sm:$0xff] %v1469_v58  ;;  %1381 = vadd.xlane.f32.xlu0 %v1380_v57  ;;  %v1377_v9 = vsel %vm99_vm0, %v3198_v34, 0.0  ;;  %v654_v60 = vmax.f32 %v648_v8, 1e-24  ;;  %v27_v57 = vld [vmem:[%s3365_s0 + $0x10] sm:$0xff] }
 0xad7   :  { %1378 = vadd.xlane.f32.xlu1 %v1377_v9 }
 0xad8   :  { %v3208_v17 = vpop.eup %2363  ;;  %2375 = vrsqrt.f32 %v654_v60 }
 0xad9   :  { %v3210_v18 = vpop.eup %2365  ;;  %v1442_v25 = vpop.permute.xlu0 %1441  ;;  %v1386_v40 = vsel %vm99_vm0, %v3208_v17, 0.0 }
 0xada   :  { %v1458_v56 = vsel %vm99_vm0, %v1426_v7, %v1442_v25  ;;  %1387 = vadd.xlane.f32.xlu0 %v1386_v40  ;;  %v1383_v22 = vsel %vm99_vm0, %v3210_v18, 0.0 }
 0xadb   :  { %v2368_v3 = vpop.eup %2367  ;;  %v1464_v27 = vsel %vm799_vm5, %v1458_v56, %v1442_v25  ;;  %1384 = vadd.xlane.f32.xlu1 %v1383_v22 }
 0xadc   :  { %v3218_v20 = vpop.eup %2369  ;;  %v665_v48 = vmul.f32 %v2368_v3, %v3107_v36  ;;  %v1470_v24 = vsel %vm231_vm4, %v1464_v27, 0.0 }
 0xadd   :  { %1476 = vst [vmem:[%s3366_s6 + $0x8] sm:$0xff] %v1470_v24  ;;  %v1392_v45 = vsel %vm99_vm0, %v3218_v20, 0.0  ;;  %v1448_v37 = vpop.permute.xlu0 %1447 }
 0xade   :  { %v671_v21 = vmul.f32 0.36, %v665_v48  ;;  %1393 = vadd.xlane.f32.xlu0 %v1392_v45 }
 0xae0   :  { %v677_v6 = vadd.f32 %v671_v21, %v29_v31 }
 0xae2   :  { %v1047_v36 = vadd.f32 %v2929_v53, %v677_v6  ;;  %v2372_v53 = vpop.eup %2371 }
 0xae3   :  { %v2374_v29 = vpop.eup %2373 }
 0xae4   :  { %v1415_v5 = vadd.f32 %v3070_v51, %v1047_v36  ;;  %v663_v51 = vmul.f32 %v2372_v53, %v3065_v35  ;;  %v664_v58 = vmul.f32 %v2374_v29, %v3113_v4  ;;  %v2376_v8 = vpop.eup %2375  ;;  %v28_v35 = vld [vmem:[%s3365_s0 + $0x18] sm:$0xff]  ;;  %v30_v4 = vld [vmem:[%s3365_s0 + $0x28] sm:$0xff] }
 0xae5   :  { %v666_v7 = vmul.f32 %v2376_v8, %v3126_v55 }
 0xae6   :  { %v1429_v59 = vmul.f32 0.33333334, %v1415_v5  ;;  %v669_v43 = vmul.f32 0.36, %v663_v51  ;;  %v670_v9 = vmul.f32 0.36, %v664_v58 }
 0xae7   :  { %v672_v40 = vmul.f32 0.36, %v666_v7 }
 0xae8   :  { %v1461_v26 = vsel %vm99_vm0, %v1429_v59, %v1448_v37  ;;  %v675_v25 = vadd.f32 %v669_v43, %v27_v57 }
 0xae9   :  { %v1467_v44 = vsel %vm799_vm5, %v1461_v26, %v1448_v37  ;;  %v678_v27 = vadd.f32 %v672_v40, %v30_v4  ;;  %v1049_v4 = vadd.f32 %v2986_v11, %v2845_v63 }
 0xaea   :  { %v1473_v1 = vsel %vm231_vm4, %v1467_v44, 0.0  ;;  %v1045_v56 = vadd.f32 %v2923_v50, %v675_v25 }
 0xaeb   :  { %1479 = vst [vmem:[%s3366_s6 + $0x20] sm:$0xff] %v1473_v1  ;;  %v1048_v21 = vadd.f32 %v2927_v52, %v678_v27  ;;  %v1482_v1 = vpop.permute.xlu0 %1481 }
 0xaec   :  { %v1413_v22 = vadd.f32 %v3057_v42, %v1045_v56  ;;  %v1050_v56 = vadd.f32 %v2984_v39, %v2842_v62  ;;  %v1051_v62 = vadd.f32 %v2992_v14, %v2853_v19 }
 0xaee   :  { %v1427_v31 = vmul.f32 0.33333334, %v1413_v22 }
 0xaef   :  { %v1486_v51 = vpop.permute.xlu0 %1485 }
 0xaf3   :  { %v3284_v43 = vpop.permute.xlu0 %1489 }
 0xaf4   :  { %1493 = vrot.lane.b32.xlu0 %v2784_v33, %s2395_s17  ;;  %v676_v33 = vadd.f32 %v670_v9, %v28_v35 }
 0xaf6   :  { %v1046_v3 = vadd.f32 %v2921_v49, %v676_v33  ;;  %v1416_v49 = vadd.f32 %v3068_v47, %v1048_v21  ;;  %v1054_v21 = vadd.f32 %v2996_v15, %v2866_v2 }
 0xaf8   :  { %v1414_v45 = vadd.f32 %v3053_v16, %v1046_v3  ;;  %v1430_v13 = vmul.f32 0.33333334, %v1416_v49 }
 0xafa   :  { %v1428_v36 = vmul.f32 0.33333334, %v1414_v45 }
 0xb03   :  { %v1343_v48 = vpop.xlane.xlu1 %1342 }
 0xb04   :  { %v1353_v55 = vsub.f32 %v3132_v61, %v1343_v48 }
 0xb06   :  { %v1367_v24 = vmul.f32 1.442695, %v1353_v55 }
 0xb07   :  { %v1444_v50 = vpop.permute.xlu1 %1443 }
 0xb08   :  { %2377 = vpow2.f32 %v1367_v24  ;;  %v1459_v6 = vsel %vm99_vm0, %v1427_v31, %v1444_v50  ;;  %v1052_v24 = vadd.f32 %v2990_v12, %v2856_v46 }
 0xb09   :  { %v1465_v30 = vsel %vm799_vm5, %v1459_v6, %v1444_v50 }
 0xb0a   :  { %v1471_v42 = vsel %vm231_vm4, %v1465_v30, 0.0  ;;  %v1053_v30 = vadd.f32 %v2998_v23, %v2863_v10 }
 0xb0b   :  { %1477 = vst [vmem:[%s3366_s6 + $0x10] sm:$0xff] %v1471_v42  ;;  %v1446_v61 = vpop.permute.xlu1 %1445 }
 0xb0c   :  { %v1460_v16 = vsel %vm99_vm0, %v1428_v36, %v1446_v61 }
 0xb0d   :  { %v1466_v52 = vsel %vm799_vm5, %v1460_v16, %v1446_v61 }
 0xb0e   :  { %v1472_v5 = vsel %vm231_vm4, %v1466_v52, 0.0 }
 0xb0f   :  { %1478 = vst [vmem:[%s3366_s6 + $0x18] sm:$0xff] %v1472_v5  ;;  %v1450_v59 = vpop.permute.xlu1 %1449 }
 0xb10   :  { %v1462_v37 = vsel %vm99_vm0, %v1430_v13, %v1450_v59 }
 0xb11   :  { %v1468_v47 = vsel %vm799_vm5, %v1462_v37, %v1450_v59 }
 0xb12   :  { %v3274_v26 = vpop.eup %2377  ;;  %v1474_v60 = vsel %vm231_vm4, %v1468_v47, 0.0 }
 0xb13   :  { %1480 = vst [vmem:[%s3366_s6 + $0x28] sm:$0xff] %v1474_v60  ;;  %v1389_v44 = vsel %vm99_vm0, %v3274_v26, 0.0  ;;  %v1484_v53 = vpop.permute.xlu1 %1483 }
 0xb14   :  { %1390 = vadd.xlane.f32.xlu1 %v1389_v44 }
 0xb17   :  { %v1488_v29 = vpop.permute.xlu1 %1487 }
 0xb1b   :  { %v1492_v58 = vpop.permute.xlu1 %1491 }
 0xb25   :  { %1495 = vrot.lane.b32.xlu1 %v2780_v32, %s2395_s17 }
 0xb5f   :  { %v1376_v8 = vpop.xlane.xlu0 %1375 }
 0xb60   :  { %2379 = vrcp.f32 %v1376_v8  ;;  %v1373_v57 = vpop.xlane.xlu1 %1372 }
 0xb61   :  { %2381 = vrcp.f32 %v1373_v57 }
 0xb63   :  { %v1382_v9 = vpop.xlane.xlu0 %1381 }
 0xb64   :  { %2383 = vrcp.f32 %v1382_v9  ;;  %v1379_v7 = vpop.xlane.xlu1 %1378 }
 0xb65   :  { %2385 = vrcp.f32 %v1379_v7 }
 0xb67   :  { %v1388_v25 = vpop.xlane.xlu0 %1387 }
 0xb68   :  { %2387 = vrcp.f32 %v1388_v25  ;;  %v1385_v35 = vpop.xlane.xlu1 %1384 }
 0xb69   :  { %2389 = vrcp.f32 %v1385_v35 }
 0xb6a   :  { %v2380_v32 = vpop.eup %2379 }
 0xb6b   :  { %v2382_v40 = vpop.eup %2381  ;;  %v1404_v33 = vmul.f32 %v2380_v32, %v3184_v28  ;;  %v3377_v32 = vld [vmem:[#allocation3_spill] sm:$0xff] }
 0xb6c   :  { %v1403_v22 = vmul.f32 %v2382_v40, %v3187_v54 }
 0xb6d   :  { %v1418_v3 = vadd.f32 %v1404_v33, %v1050_v56 }
 0xb6e   :  { %v2384_v27 = vpop.eup %2383  ;;  %v1417_v48 = vadd.f32 %v1403_v22, %v1049_v4 }
 0xb6f   :  { %v2386_v55 = vpop.eup %2385  ;;  %v1432_v31 = vmul.f32 0.33333334, %v1418_v3  ;;  %v1406_v45 = vmul.f32 %v2384_v27, %v3194_v38 }
 0xb70   :  { %v1431_v39 = vmul.f32 0.33333334, %v1417_v48  ;;  %v1405_v28 = vmul.f32 %v2386_v55, %v3198_v34 }
 0xb71   :  { %v1506_v63 = vsel %vm99_vm0, %v1432_v31, %v1484_v53  ;;  %v1420_v11 = vadd.f32 %v1406_v45, %v1052_v24 }
 0xb72   :  { %v2388_v54 = vpop.eup %2387  ;;  %v1514_v50 = vsel %vm799_vm5, %v1506_v63, %v1484_v53  ;;  %v1505_v46 = vsel %vm99_vm0, %v1431_v39, %v1482_v1  ;;  %v1419_v12 = vadd.f32 %v1405_v28, %v1051_v62 }
 0xb73   :  { %v2390_v6 = vpop.eup %2389  ;;  %v1522_v38 = vsel %vm231_vm4, %v1514_v50, 0.0  ;;  %v1513_v19 = vsel %vm799_vm5, %v1505_v46, %v1482_v1  ;;  %v1434_v14 = vmul.f32 0.33333334, %v1420_v11  ;;  %v1408_v34 = vmul.f32 %v2388_v54, %v3208_v17  ;;  %v1394_v1 = vpop.xlane.xlu0 %1393 }
 0xb74   :  { %v1521_v42 = vsel %vm231_vm4, %v1513_v19, 0.0  ;;  %v1433_v36 = vmul.f32 0.33333334, %v1419_v12  ;;  %v1407_v2 = vmul.f32 %v2390_v6, %v3210_v18  ;;  %1530 = vst [vmem:[%s3367_s7 + $0x8] sm:$0xff] %v1522_v38  ;;  %2391 = vrcp.f32 %v1394_v1 }
 0xb75   :  { %v1508_v15 = vsel %vm99_vm0, %v1434_v14, %v1488_v29  ;;  %v1422_v49 = vadd.f32 %v1408_v34, %v1054_v21  ;;  %1529 = vst [vmem:[%s3367_s7] sm:$0xff] %v1521_v42 }
 0xb76   :  { %v1516_v17 = vsel %vm799_vm5, %v1508_v15, %v1488_v29  ;;  %v1507_v10 = vsel %vm99_vm0, %v1433_v36, %v1486_v51  ;;  %v1421_v23 = vadd.f32 %v1407_v2, %v1053_v30  ;;  %v1056_v29 = vadd.f32 %v3002_v0, %v2874_v41 }
 0xb77   :  { %v1524_v61 = vsel %vm231_vm4, %v1516_v17, 0.0  ;;  %v1515_v18 = vsel %vm799_vm5, %v1507_v10, %v1486_v51  ;;  %v1436_v16 = vmul.f32 0.33333334, %v1422_v49  ;;  %v1494_v33 = vpop.permute.xlu0 %1493 }
 0xb78   :  { %v1523_v52 = vsel %vm231_vm4, %v1515_v18, 0.0  ;;  %v1435_v5 = vmul.f32 0.33333334, %v1421_v23  ;;  %1532 = vst [vmem:[%s3367_s7 + $0x18] sm:$0xff] %v1524_v61 }
 0xb79   :  { %v1510_v13 = vsel %vm99_vm0, %v1436_v16, %v1492_v58  ;;  %1531 = vst [vmem:[%s3367_s7 + $0x10] sm:$0xff] %v1523_v52 }
 0xb7a   :  { %v1518_v59 = vsel %vm799_vm5, %v1510_v13, %v1492_v58  ;;  %v1509_v37 = vsel %vm99_vm0, %v1435_v5, %v3284_v43 }
 0xb7b   :  { %v1526_v47 = vsel %vm231_vm4, %v1518_v59, 0.0  ;;  %v1517_v60 = vsel %vm799_vm5, %v1509_v37, %v3284_v43 }
 0xb7c   :  { %v1525_v44 = vsel %vm231_vm4, %v1517_v60, 0.0  ;;  %1534 = vst [vmem:[%s3367_s7 + $0x28] sm:$0xff] %v1526_v47 }
 0xb7d   :  { %1533 = vst [vmem:[%s3367_s7 + $0x20] sm:$0xff] %v1525_v44 }
 0xb7e   :  { %v2392_v53 = vpop.eup %2391 }
 0xb7f   :  { %v1410_v51 = vmul.f32 %v2392_v53, %v3218_v20  ;;  %v3376_v20 = vld [vmem:[#allocation2_spill] sm:$0xff] }
 0xb80   :  { %v1055_v40 = vadd.f32 %v3377_v32, %v3376_v20 }
 0xb81   :  { %v1424_v58 = vadd.f32 %v1410_v51, %v1056_v29 }
 0xb83   :  { %v1438_v8 = vmul.f32 0.33333334, %v1424_v58 }
 0xba1   :  { %v1391_v43 = vpop.xlane.xlu1 %1390 }
 0xba2   :  { %2393 = vrcp.f32 %v1391_v43 }
 0xba5   :  { %v1496_v57 = vpop.permute.xlu1 %1495 }
 0xba6   :  { %v1512_v9 = vsel %vm99_vm0, %v1438_v8, %v1496_v57 }
 0xba7   :  { %v1520_v7 = vsel %vm799_vm5, %v1512_v9, %v1496_v57 }
 0xba8   :  { %v1528_v25 = vsel %vm231_vm4, %v1520_v7, 0.0 }
 0xba9   :  { %1536 = vst [vmem:[%s3367_s7 + $0x38] sm:$0xff] %v1528_v25 }
 0xbac   :  { %v2394_v35 = vpop.eup %2393 }
 0xbad   :  { %v1409_v41 = vmul.f32 %v2394_v35, %v3274_v26 }
 0xbaf   :  { %v1423_v0 = vadd.f32 %v1409_v41, %v1055_v40 }
 0xbb1   :  { %v1437_v56 = vmul.f32 0.33333334, %v1423_v0 }
 0xbb3   :  { %v1511_v4 = vsel %vm99_vm0, %v1437_v56, %v1494_v33 }
 0xbb4   :  { %v1519_v22 = vsel %vm799_vm5, %v1511_v4, %v1494_v33 }
 0xbb5   :  { %v1527_v3 = vsel %vm231_vm4, %v1519_v22, 0.0 }
 0xbb6   :  { %1535 = vst [vmem:[%s3367_s7 + $0x30] sm:$0xff] %v1527_v3 }

</bundles_post_ra>
